<compile_context>
chip_gen: v5e
topology: v5e:2x2
jax: 0.10.0
libtpu: 0.0.40
codegen_flags: <defaults>
</compile_context>

<pallas_src>
from functools import partial

import numpy as np
import jax
import jax.numpy as jnp
from jax.experimental import pallas as pl
from jax.experimental.pallas import tpu as pltpu


# ----------------------------------------------------------------------------
# shared: im2col (into VMEM scratch) + single GEMM + bias + BN-stats epilogue
# ----------------------------------------------------------------------------
def _conv3x3_im2col(xpad_ref, patch_ref, wg_ref, b_ref, mask_ref,
                    yw_ref, st_ref, H2, W2):
    Wp = W2 + 2
    wide = H2 * Wp
    C = xpad_ref.shape[0]

    # im2col into a VMEM scratch: rows = (tap, channel), lanes = flattened
    # output rows (each row carries 2 junk lanes that the mask zeroes later).
    for tap in range(9):
        dh, dw = tap // 3, tap % 3
        s = dh * Wp + dw
        patch_ref[tap * C:(tap + 1) * C, :] = xpad_ref[:, s:s + wide]

    # one MXU GEMM instead of 9 tiny strided-slice matmuls.
    y = jnp.dot(wg_ref[...], patch_ref[...],
                preferred_element_type=jnp.float32)          # (Cout, wide)
    y = (y + b_ref[...]) * mask_ref[...]                     # bias, zero junk lanes
    yw_ref[0, :, :] = y

    # BatchNorm batch-statistics epilogue (per-sample partial sums) computed
    # while y is still resident -- no separate HBM re-read for BN.
    st_ref[0, :, 0:1] = jnp.sum(y, axis=1, keepdims=True)
    st_ref[0, :, 1:2] = jnp.sum(y * y, axis=1, keepdims=True)


# ----------------------------------------------------------------------------
# K1: fused maxpool2x2 + in-kernel padding + conv1 + bias + BN1 stats
# ----------------------------------------------------------------------------
def _pool_conv_stats_kernel(x_ref, wg_ref, b_ref, sel_ref, mask_ref,
                            yw_ref, st_ref, xpad_ref, patch_ref):
    Cin = x_ref.shape[1]
    H, W = x_ref.shape[2], x_ref.shape[3]
    H2, W2 = H // 2, W // 2
    Wp = W2 + 2

    # zero the flat padded-image scratch, then write pooled rows into its
    # interior -> 'SAME' zero padding for free (no jnp.pad / extra HBM pass).
    xpad_ref[...] = jnp.zeros_like(xpad_ref)
    sel = sel_ref[...]                                        # (W, 2*W2) col selector
    for i in range(H2):
        r0 = x_ref[0, :, 2 * i, :]                            # (Cin, W)
        r1 = x_ref[0, :, 2 * i + 1, :]
        rm = jnp.maximum(r0, r1)                              # pool along H
        e = jnp.dot(rm, sel, preferred_element_type=jnp.float32)
        prow = jnp.maximum(e[:, :W2], e[:, W2:])              # pool along W
        off = (i + 1) * Wp + 1
        xpad_ref[:, off:off + W2] = prow

    _conv3x3_im2col(xpad_ref, patch_ref, wg_ref, b_ref, mask_ref,
                    yw_ref, st_ref, H2, W2)


# ----------------------------------------------------------------------------
# K2: BN1+ReLU applied on read -> in-kernel padding -> conv2 + bias + BN2 stats
# ----------------------------------------------------------------------------
def _bnrelu_conv_stats_kernel(H2, W2, yin_ref, wg_ref, b_ref, sc_ref, sh_ref,
                              mask_ref, yw_ref, st_ref, xpad_ref, patch_ref):
    Wp = W2 + 2
    wide = H2 * Wp

    # normalize + ReLU while the previous conv's output is read; the masked
    # "wide" layout lines up so a single store lands every value at its padded
    # position and every junk lane on a zero-padding position.
    a = yin_ref[0, :, :] * sc_ref[...] + sh_ref[...]
    a = jnp.maximum(a, 0.0) * mask_ref[...]
    xpad_ref[...] = jnp.zeros_like(xpad_ref)
    xpad_ref[:, Wp + 1:Wp + 1 + wide] = a

    _conv3x3_im2col(xpad_ref, patch_ref, wg_ref, b_ref, mask_ref,
                    yw_ref, st_ref, H2, W2)


# ----------------------------------------------------------------------------
# K3: BN2 + ReLU + strip padding lanes -> exact NCHW output
# ----------------------------------------------------------------------------
def _bnrelu_unpad_kernel(yin_ref, sc_ref, sh_ref, out_ref):
    H2, W2 = out_ref.shape[2], out_ref.shape[3]
    Wp = W2 + 2
    a = jnp.maximum(yin_ref[0, :, :] * sc_ref[...] + sh_ref[...], 0.0)
    for h in range(H2):
        out_ref[0, :, h, :] = a[:, h * Wp:h * Wp + W2]


# ----------------------------------------------------------------------------
# wrapper
# ----------------------------------------------------------------------------
def _bn_scale_shift(st, gamma, beta, count, eps=1e-5):
    # tiny per-channel math on (N, C, 2) partial sums -> (C, 1) scale / shift.
    s = jnp.sum(st[:, :, 0], axis=0)
    ss = jnp.sum(st[:, :, 1], axis=0)
    mean = s / count
    var = jnp.maximum(ss / count - mean * mean, 0.0)          # biased (PyTorch fwd)
    scale = gamma * jax.lax.rsqrt(var + eps)
    shift = beta - mean * scale
    return scale.reshape(-1, 1), shift.reshape(-1, 1)


def down_forward(x_nchw, p):
    N, Cin, H, W = x_nchw.shape
    assert H % 2 == 0 and W % 2 == 0
    H2, W2 = H // 2, W // 2
    Wp = W2 + 2
    WIDE = H2 * Wp                      # flattened spatial dim (on lanes)
    FLAT = (H2 + 2) * Wp + 2            # flat padded image + 2 overrun lanes
    Cout = p["w1"].shape[-1]
    f32 = jnp.float32

    # trace-time constants (tiny): even/odd column selector and valid-lane mask
    sel = np.zeros((W, 2 * W2), np.float32)
    sel[2 * np.arange(W2), np.arange(W2)] = 1.0
    sel[2 * np.arange(W2) + 1, W2 + np.arange(W2)] = 1.0
    sel = jnp.asarray(sel)
    lane = np.arange(WIDE)
    mask = jnp.asarray(((lane % Wp) < W2).astype(np.float32).reshape(1, WIDE))

    # weights in GEMM form: (Cout, 9*Cin), columns ordered (dh, dw, cin)
    w1g = jnp.transpose(p["w1"], (3, 0, 1, 2)).reshape(Cout, 9 * Cin)
    w2g = jnp.transpose(p["w2"], (3, 0, 1, 2)).reshape(Cout, 9 * Cout)
    b1 = p["b1"].reshape(Cout, 1)
    b2 = p["b2"].reshape(Cout, 1)

    par = pltpu.CompilerParams(dimension_semantics=("parallel",))

    # ---- K1: pool + conv1 + bias + BN1 stats ----
    y1w, st1 = pl.pallas_call(
        _pool_conv_stats_kernel,
        out_shape=(jax.ShapeDtypeStruct((N, Cout, WIDE), f32),
                   jax.ShapeDtypeStruct((N, Cout, 2), f32)),
        grid=(N,),
        in_specs=[
            pl.BlockSpec((1, Cin, H, W), lambda n: (n, 0, 0, 0)),
            pl.BlockSpec((Cout, 9 * Cin), lambda n: (0, 0)),
            pl.BlockSpec((Cout, 1), lambda n: (0, 0)),
            pl.BlockSpec((W, 2 * W2), lambda n: (0, 0)),
            pl.BlockSpec((1, WIDE), lambda n: (0, 0)),
        ],
        out_specs=(pl.BlockSpec((1, Cout, WIDE), lambda n: (n, 0, 0)),
                   pl.BlockSpec((1, Cout, 2), lambda n: (n, 0, 0))),
        scratch_shapes=[pltpu.VMEM((Cin, FLAT), f32),
                        pltpu.VMEM((9 * Cin, WIDE), f32)],
        compiler_params=par,
    )(x_nchw, w1g, b1, sel, mask)

    sc1, sh1 = _bn_scale_shift(st1, p["g1"], p["beta1"], N * H2 * W2)

    # ---- K2: BN1+ReLU (on read) + conv2 + bias + BN2 stats ----
    y2w, st2 = pl.pallas_call(
        partial(_bnrelu_conv_stats_kernel, H2, W2),
        out_shape=(jax.ShapeDtypeStruct((N, Cout, WIDE), f32),
                   jax.ShapeDtypeStruct((N, Cout, 2), f32)),
        grid=(N,),
        in_specs=[
            pl.BlockSpec((1, Cout, WIDE), lambda n: (n, 0, 0)),
            pl.BlockSpec((Cout, 9 * Cout), lambda n: (0, 0)),
            pl.BlockSpec((Cout, 1), lambda n: (0, 0)),
            pl.BlockSpec((Cout, 1), lambda n: (0, 0)),
            pl.BlockSpec((Cout, 1), lambda n: (0, 0)),
            pl.BlockSpec((1, WIDE), lambda n: (0, 0)),
        ],
        out_specs=(pl.BlockSpec((1, Cout, WIDE), lambda n: (n, 0, 0)),
                   pl.BlockSpec((1, Cout, 2), lambda n: (n, 0, 0))),
        scratch_shapes=[pltpu.VMEM((Cout, FLAT), f32),
                        pltpu.VMEM((9 * Cout, WIDE), f32)],
        compiler_params=par,
    )(y1w, w2g, b2, sc1, sh1, mask)

    sc2, sh2 = _bn_scale_shift(st2, p["g2"], p["beta2"], N * H2 * W2)

    # ---- K3: BN2+ReLU + unpad -> NCHW output ----
    out = pl.pallas_call(
        _bnrelu_unpad_kernel,
        out_shape=jax.ShapeDtypeStruct((N, Cout, H2, W2), f32),
        grid=(N,),
        in_specs=[
            pl.BlockSpec((1, Cout, WIDE), lambda n: (n, 0, 0)),
            pl.BlockSpec((Cout, 1), lambda n: (0, 0)),
            pl.BlockSpec((Cout, 1), lambda n: (0, 0)),
        ],
        out_specs=pl.BlockSpec((1, Cout, H2, W2), lambda n: (n, 0, 0, 0)),
        compiler_params=par,
    )(y2w, sc2, sh2)
    return out


# ------------------------- pure-JAX reference (check) -----------------------
def ref_forward(x_nchw, p):
    x = jax.lax.reduce_window(x_nchw, -jnp.inf, jax.lax.max,
                              (1, 1, 2, 2), (1, 1, 2, 2), "VALID")

    def block(x, w, b, g, bt):
        y = jax.lax.conv_general_dilated(
            x, w, window_strides=(1, 1), padding="SAME",
            dimension_numbers=("NCHW", "HWIO", "NCHW"),
            precision=jax.lax.Precision.HIGHEST)
        y = y + b.reshape(1, -1, 1, 1)
        mean = jnp.mean(y, axis=(0, 2, 3), keepdims=True)
        var = jnp.mean((y - mean) ** 2, axis=(0, 2, 3), keepdims=True)
        y = (y - mean) * jax.lax.rsqrt(var + 1e-5)
        y = y * g.reshape(1, -1, 1, 1) + bt.reshape(1, -1, 1, 1)
        return jnp.maximum(y, 0.0)

    x = block(x, p["w1"], p["b1"], p["g1"], p["beta1"])
    x = block(x, p["w2"], p["b2"], p["g2"], p["beta2"])
    return x


if __name__ == "__main__":
    N, Cin, Cout, H, W = 2, 4, 8, 16, 16
    key = jax.random.PRNGKey(0)
    ks = jax.random.split(key, 9)
    params = dict(
        w1=0.2 * jax.random.normal(ks[0], (3, 3, Cin, Cout), jnp.float32),
        b1=0.1 * jax.random.normal(ks[1], (Cout,), jnp.float32),
        g1=1.0 + 0.1 * jax.random.normal(ks[2], (Cout,), jnp.float32),
        beta1=0.1 * jax.random.normal(ks[3], (Cout,), jnp.float32),
        w2=0.2 * jax.random.normal(ks[4], (3, 3, Cout, Cout), jnp.float32),
        b2=0.1 * jax.random.normal(ks[5], (Cout,), jnp.float32),
        g2=1.0 + 0.1 * jax.random.normal(ks[6], (Cout,), jnp.float32),
        beta2=0.1 * jax.random.normal(ks[7], (Cout,), jnp.float32),
    )
    x = jax.random.normal(ks[8], (N, Cin, H, W), jnp.float32)

    out = jax.jit(down_forward)(x, params)
    out = jax.block_until_ready(out)

    assert out.shape == (N, Cout, H // 2, W // 2), out.shape
    ref = ref_forward(x, params)
    assert jnp.allclose(out, ref, atol=2e-2, rtol=2e-2), float(
        jnp.max(jnp.abs(out - ref)))

    print("KERNEL_OK")
</pallas_src>

<mosaic_0001>
module attributes {stable_mosaic.version = 11 : i64} {
  func.func @_bnrelu_conv_stats_kernel(%arg0: i32, %arg1: memref<1x8x80xf32, #tpu.memory_space<vmem>>, %arg2: memref<8x72xf32, #tpu.memory_space<vmem>>, %arg3: memref<8x1xf32, #tpu.memory_space<vmem>>, %arg4: memref<8x1xf32, #tpu.memory_space<vmem>>, %arg5: memref<8x1xf32, #tpu.memory_space<vmem>>, %arg6: memref<1x80xf32, #tpu.memory_space<vmem>>, %arg7: memref<1x8x80xf32, #tpu.memory_space<vmem>>, %arg8: memref<1x8x2xf32, #tpu.memory_space<vmem>>, %arg9: memref<8x102xf32, #tpu.memory_space<vmem>>, %arg10: memref<72x80xf32, #tpu.memory_space<vmem>>) attributes {dimension_semantics = [#tpu.dimension_semantics<parallel>], iteration_bounds = array<i64: 2>, scalar_prefetch = 0 : i64, scratch_operands = 2 : i64, tpu.core_type = #tpu.core_type<tc>, window_params = [{transform_indices = @transform_0, window_bounds = array<i64: 1, 8, 80>}, {pipeline_mode = #tpu.pipeline_mode<synchronous>, transform_indices = @transform_1, window_bounds = array<i64: 8, 72>}, {pipeline_mode = #tpu.pipeline_mode<synchronous>, transform_indices = @transform_2, window_bounds = array<i64: 8, 1>}, {pipeline_mode = #tpu.pipeline_mode<synchronous>, transform_indices = @transform_3, window_bounds = array<i64: 8, 1>}, {pipeline_mode = #tpu.pipeline_mode<synchronous>, transform_indices = @transform_4, window_bounds = array<i64: 8, 1>}, {pipeline_mode = #tpu.pipeline_mode<synchronous>, transform_indices = @transform_5, window_bounds = array<i64: 1, 80>}, {transform_indices = @transform_6, window_bounds = array<i64: 1, 8, 80>}, {transform_indices = @transform_7, window_bounds = array<i64: 1, 8, 2>}]} {
    %c0 = arith.constant 0 : index
    %c0_0 = arith.constant 0 : index
    %c0_1 = arith.constant 0 : index
    %0 = vector.load %arg1[%c0, %c0_0, %c0_1] : memref<1x8x80xf32, #tpu.memory_space<vmem>>, vector<1x8x80xf32>
    %1 = vector.shape_cast %0 : vector<1x8x80xf32> to vector<8x80xf32>
    %c0_2 = arith.constant 0 : index
    %c0_3 = arith.constant 0 : index
    %2 = vector.load %arg4[%c0_2, %c0_3] : memref<8x1xf32, #tpu.memory_space<vmem>>, vector<8x1xf32>
    %3 = vector.broadcast %2 : vector<8x1xf32> to vector<8x80xf32>
    %4 = arith.mulf %1, %3 : vector<8x80xf32>
    %c0_4 = arith.constant 0 : index
    %c0_5 = arith.constant 0 : index
    %5 = vector.load %arg5[%c0_4, %c0_5] : memref<8x1xf32, #tpu.memory_space<vmem>>, vector<8x1xf32>
    %6 = vector.broadcast %5 : vector<8x1xf32> to vector<8x80xf32>
    %7 = arith.addf %4, %6 : vector<8x80xf32>
    %cst = arith.constant 0.000000e+00 : f32
    %8 = vector.broadcast %cst : f32 to vector<8x80xf32>
    %9 = arith.maximumf %7, %8 : vector<8x80xf32>
    %c0_6 = arith.constant 0 : index
    %c0_7 = arith.constant 0 : index
    %10 = vector.load %arg6[%c0_6, %c0_7] : memref<1x80xf32, #tpu.memory_space<vmem>>, vector<1x80xf32>
    %11 = vector.broadcast %10 : vector<1x80xf32> to vector<8x80xf32>
    %12 = arith.mulf %9, %11 : vector<8x80xf32>
    %cst_8 = arith.constant 0.000000e+00 : f32
    %13 = vector.broadcast %cst_8 : f32 to vector<8x102xf32>
    %c0_9 = arith.constant 0 : index
    %c0_10 = arith.constant 0 : index
    %14 = vector.load %arg9[%c0_9, %c0_10] : memref<8x102xf32, #tpu.memory_space<vmem>>, vector<8x102xf32>
    tpu.vector_store %arg9[%c0_9, %c0_10], %13 {strides = array<i32>} : memref<8x102xf32, #tpu.memory_space<vmem>>, vector<8x102xf32>,
    %c0_11 = arith.constant 0 : index
    %c11 = arith.constant 11 : index
    %15 = vector.load %arg9[%c0_11, %c11] : memref<8x102xf32, #tpu.memory_space<vmem>>, vector<8x80xf32>
    tpu.vector_store %arg9[%c0_11, %c11], %12 {strides = array<i32>} : memref<8x102xf32, #tpu.memory_space<vmem>>, vector<8x80xf32>,
    %c0_12 = arith.constant 0 : index
    %c0_13 = arith.constant 0 : index
    %16 = vector.load %arg9[%c0_12, %c0_13] : memref<8x102xf32, #tpu.memory_space<vmem>>, vector<8x80xf32>
    %c0_14 = arith.constant 0 : index
    %c0_15 = arith.constant 0 : index
    %17 = vector.load %arg10[%c0_14, %c0_15] : memref<72x80xf32, #tpu.memory_space<vmem>>, vector<8x80xf32>
    tpu.vector_store %arg10[%c0_14, %c0_15], %16 {strides = array<i32>} : memref<72x80xf32, #tpu.memory_space<vmem>>, vector<8x80xf32>,
    %c0_16 = arith.constant 0 : index
    %c1 = arith.constant 1 : index
    %18 = vector.load %arg9[%c0_16, %c1] : memref<8x102xf32, #tpu.memory_space<vmem>>, vector<8x80xf32>
    %c8 = arith.constant 8 : index
    %c0_17 = arith.constant 0 : index
    %19 = vector.load %arg10[%c8, %c0_17] : memref<72x80xf32, #tpu.memory_space<vmem>>, vector<8x80xf32>
    tpu.vector_store %arg10[%c8, %c0_17], %18 {strides = array<i32>} : memref<72x80xf32, #tpu.memory_space<vmem>>, vector<8x80xf32>,
    %c0_18 = arith.constant 0 : index
    %c2 = arith.constant 2 : index
    %20 = vector.load %arg9[%c0_18, %c2] : memref<8x102xf32, #tpu.memory_space<vmem>>, vector<8x80xf32>
    %c16 = arith.constant 16 : index
    %c0_19 = arith.constant 0 : index
    %21 = vector.load %arg10[%c16, %c0_19] : memref<72x80xf32, #tpu.memory_space<vmem>>, vector<8x80xf32>
    tpu.vector_store %arg10[%c16, %c0_19], %20 {strides = array<i32>} : memref<72x80xf32, #tpu.memory_space<vmem>>, vector<8x80xf32>,
    %c0_20 = arith.constant 0 : index
    %c10 = arith.constant 10 : index
    %22 = vector.load %arg9[%c0_20, %c10] : memref<8x102xf32, #tpu.memory_space<vmem>>, vector<8x80xf32>
    %c24 = arith.constant 24 : index
    %c0_21 = arith.constant 0 : index
    %23 = vector.load %arg10[%c24, %c0_21] : memref<72x80xf32, #tpu.memory_space<vmem>>, vector<8x80xf32>
    tpu.vector_store %arg10[%c24, %c0_21], %22 {strides = array<i32>} : memref<72x80xf32, #tpu.memory_space<vmem>>, vector<8x80xf32>,
    %c0_22 = arith.constant 0 : index
    %c11_23 = arith.constant 11 : index
    %24 = vector.load %arg9[%c0_22, %c11_23] : memref<8x102xf32, #tpu.memory_space<vmem>>, vector<8x80xf32>
    %c32 = arith.constant 32 : index
    %c0_24 = arith.constant 0 : index
    %25 = vector.load %arg10[%c32, %c0_24] : memref<72x80xf32, #tpu.memory_space<vmem>>, vector<8x80xf32>
    tpu.vector_store %arg10[%c32, %c0_24], %24 {strides = array<i32>} : memref<72x80xf32, #tpu.memory_space<vmem>>, vector<8x80xf32>,
    %c0_25 = arith.constant 0 : index
    %c12 = arith.constant 12 : index
    %26 = vector.load %arg9[%c0_25, %c12] : memref<8x102xf32, #tpu.memory_space<vmem>>, vector<8x80xf32>
    %c40 = arith.constant 40 : index
    %c0_26 = arith.constant 0 : index
    %27 = vector.load %arg10[%c40, %c0_26] : memref<72x80xf32, #tpu.memory_space<vmem>>, vector<8x80xf32>
    tpu.vector_store %arg10[%c40, %c0_26], %26 {strides = array<i32>} : memref<72x80xf32, #tpu.memory_space<vmem>>, vector<8x80xf32>,
    %c0_27 = arith.constant 0 : index
    %c20 = arith.constant 20 : index
    %28 = vector.load %arg9[%c0_27, %c20] : memref<8x102xf32, #tpu.memory_space<vmem>>, vector<8x80xf32>
    %c48 = arith.constant 48 : index
    %c0_28 = arith.constant 0 : index
    %29 = vector.load %arg10[%c48, %c0_28] : memref<72x80xf32, #tpu.memory_space<vmem>>, vector<8x80xf32>
    tpu.vector_store %arg10[%c48, %c0_28], %28 {strides = array<i32>} : memref<72x80xf32, #tpu.memory_space<vmem>>, vector<8x80xf32>,
    %c0_29 = arith.constant 0 : index
    %c21 = arith.constant 21 : index
    %30 = vector.load %arg9[%c0_29, %c21] : memref<8x102xf32, #tpu.memory_space<vmem>>, vector<8x80xf32>
    %c56 = arith.constant 56 : index
    %c0_30 = arith.constant 0 : index
    %31 = vector.load %arg10[%c56, %c0_30] : memref<72x80xf32, #tpu.memory_space<vmem>>, vector<8x80xf32>
    tpu.vector_store %arg10[%c56, %c0_30], %30 {strides = array<i32>} : memref<72x80xf32, #tpu.memory_space<vmem>>, vector<8x80xf32>,
    %c0_31 = arith.constant 0 : index
    %c22 = arith.constant 22 : index
    %32 = vector.load %arg9[%c0_31, %c22] : memref<8x102xf32, #tpu.memory_space<vmem>>, vector<8x80xf32>
    %c64 = arith.constant 64 : index
    %c0_32 = arith.constant 0 : index
    %33 = vector.load %arg10[%c64, %c0_32] : memref<72x80xf32, #tpu.memory_space<vmem>>, vector<8x80xf32>
    tpu.vector_store %arg10[%c64, %c0_32], %32 {strides = array<i32>} : memref<72x80xf32, #tpu.memory_space<vmem>>, vector<8x80xf32>,
    %c0_33 = arith.constant 0 : index
    %c0_34 = arith.constant 0 : index
    %34 = vector.load %arg2[%c0_33, %c0_34] : memref<8x72xf32, #tpu.memory_space<vmem>>, vector<8x72xf32>
    %c0_35 = arith.constant 0 : index
    %c0_36 = arith.constant 0 : index
    %35 = vector.load %arg10[%c0_35, %c0_36] : memref<72x80xf32, #tpu.memory_space<vmem>>, vector<72x80xf32>
    %cst_37 = arith.constant dense<0.000000e+00> : vector<8x80xf32>
    %36 = tpu.matmul %34, %35, %cst_37 {dimension_numbers = #tpu.dot_dimension_numbers<[1], [0], [0], [1], [0, 0, 1, 1], [], []>} : vector<8x72xf32>, vector<72x80xf32>, vector<8x80xf32> -> vector<8x80xf32>
    %c0_38 = arith.constant 0 : index
    %c0_39 = arith.constant 0 : index
    %37 = vector.load %arg3[%c0_38, %c0_39] : memref<8x1xf32, #tpu.memory_space<vmem>>, vector<8x1xf32>
    %38 = vector.broadcast %37 : vector<8x1xf32> to vector<8x80xf32>
    %39 = arith.addf %36, %38 : vector<8x80xf32>
    %c0_40 = arith.constant 0 : index
    %c0_41 = arith.constant 0 : index
    %40 = vector.load %arg6[%c0_40, %c0_41] : memref<1x80xf32, #tpu.memory_space<vmem>>, vector<1x80xf32>
    %41 = vector.broadcast %40 : vector<1x80xf32> to vector<8x80xf32>
    %42 = arith.mulf %39, %41 : vector<8x80xf32>
    %c0_42 = arith.constant 0 : index
    %c0_43 = arith.constant 0 : index
    %c0_44 = arith.constant 0 : index
    %43 = vector.load %arg7[%c0_42, %c0_43, %c0_44] : memref<1x8x80xf32, #tpu.memory_space<vmem>>, vector<1x8x80xf32>
    %44 = vector.shape_cast %43 : vector<1x8x80xf32> to vector<8x80xf32>
    %45 = vector.shape_cast %42 : vector<8x80xf32> to vector<1x8x80xf32>
    tpu.vector_store %arg7[%c0_42, %c0_43, %c0_44], %45 {strides = array<i32>} : memref<1x8x80xf32, #tpu.memory_space<vmem>>, vector<1x8x80xf32>,
    %cst_45 = arith.constant dense<0.000000e+00> : vector<8xf32>
    %46 = vector.multi_reduction <add>, %42, %cst_45 [1] : vector<8x80xf32> to vector<8xf32>
    %47 = vector.shape_cast %46 : vector<8xf32> to vector<8x1xf32>
    %c0_46 = arith.constant 0 : index
    %c0_47 = arith.constant 0 : index
    %c0_48 = arith.constant 0 : index
    %48 = vector.load %arg8[%c0_46, %c0_47, %c0_48] : memref<1x8x2xf32, #tpu.memory_space<vmem>>, vector<1x8x1xf32>
    %49 = vector.shape_cast %48 : vector<1x8x1xf32> to vector<8x1xf32>
    %50 = vector.shape_cast %47 : vector<8x1xf32> to vector<1x8x1xf32>
    tpu.vector_store %arg8[%c0_46, %c0_47, %c0_48], %50 {strides = array<i32>} : memref<1x8x2xf32, #tpu.memory_space<vmem>>, vector<1x8x1xf32>,
    %51 = arith.mulf %42, %42 : vector<8x80xf32>
    %cst_49 = arith.constant dense<0.000000e+00> : vector<8xf32>
    %52 = vector.multi_reduction <add>, %51, %cst_49 [1] : vector<8x80xf32> to vector<8xf32>
    %53 = vector.shape_cast %52 : vector<8xf32> to vector<8x1xf32>
    %c0_50 = arith.constant 0 : index
    %c0_51 = arith.constant 0 : index
    %c1_52 = arith.constant 1 : index
    %54 = vector.load %arg8[%c0_50, %c0_51, %c1_52] : memref<1x8x2xf32, #tpu.memory_space<vmem>>, vector<1x8x1xf32>
    %55 = vector.shape_cast %54 : vector<1x8x1xf32> to vector<8x1xf32>
    %56 = vector.shape_cast %53 : vector<8x1xf32> to vector<1x8x1xf32>
    tpu.vector_store %arg8[%c0_50, %c0_51, %c1_52], %56 {strides = array<i32>} : memref<1x8x2xf32, #tpu.memory_space<vmem>>, vector<1x8x1xf32>,
    return
  }
  func.func @transform_0(%arg0: i32) -> (i32, i32, i32) {
    %c0_i32 = arith.constant 0 : i32
    %c0_i32_0 = arith.constant 0 : i32
    %c0_i32_1 = arith.constant 0 : i32
    return %arg0, %c0_i32, %c0_i32_0 : i32, i32, i32
  }
  func.func @transform_1(%arg0: i32) -> (i32, i32) {
    %c0_i32 = arith.constant 0 : i32
    %c0_i32_0 = arith.constant 0 : i32
    %c0_i32_1 = arith.constant 0 : i32
    return %c0_i32, %c0_i32_0 : i32, i32
  }
  func.func @transform_2(%arg0: i32) -> (i32, i32) {
    %c0_i32 = arith.constant 0 : i32
    %c0_i32_0 = arith.constant 0 : i32
    %c0_i32_1 = arith.constant 0 : i32
    return %c0_i32, %c0_i32_0 : i32, i32
  }
  func.func @transform_3(%arg0: i32) -> (i32, i32) {
    %c0_i32 = arith.constant 0 : i32
    %c0_i32_0 = arith.constant 0 : i32
    %c0_i32_1 = arith.constant 0 : i32
    return %c0_i32, %c0_i32_0 : i32, i32
  }
  func.func @transform_4(%arg0: i32) -> (i32, i32) {
    %c0_i32 = arith.constant 0 : i32
    %c0_i32_0 = arith.constant 0 : i32
    %c0_i32_1 = arith.constant 0 : i32
    return %c0_i32, %c0_i32_0 : i32, i32
  }
  func.func @transform_5(%arg0: i32) -> (i32, i32) {
    %c0_i32 = arith.constant 0 : i32
    %c0_i32_0 = arith.constant 0 : i32
    %c0_i32_1 = arith.constant 0 : i32
    return %c0_i32, %c0_i32_0 : i32, i32
  }
  func.func @transform_6(%arg0: i32) -> (i32, i32, i32) {
    %c0_i32 = arith.constant 0 : i32
    %c0_i32_0 = arith.constant 0 : i32
    %c0_i32_1 = arith.constant 0 : i32
    return %arg0, %c0_i32, %c0_i32_0 : i32, i32, i32
  }
  func.func @transform_7(%arg0: i32) -> (i32, i32, i32) {
    %c0_i32 = arith.constant 0 : i32
    %c0_i32_0 = arith.constant 0 : i32
    %c0_i32_1 = arith.constant 0 : i32
    return %arg0, %c0_i32, %c0_i32_0 : i32, i32, i32
  }
}

module attributes {stable_mosaic.version = 11 : i64} {
  func.func @_pool_conv_stats_kernel(%arg0: i32, %arg1: memref<1x4x16x16xf32, #tpu.memory_space<vmem>>, %arg2: memref<8x36xf32, #tpu.memory_space<vmem>>, %arg3: memref<8x1xf32, #tpu.memory_space<vmem>>, %arg4: memref<16x16xf32, #tpu.memory_space<vmem>>, %arg5: memref<1x80xf32, #tpu.memory_space<vmem>>, %arg6: memref<1x8x80xf32, #tpu.memory_space<vmem>>, %arg7: memref<1x8x2xf32, #tpu.memory_space<vmem>>, %arg8: memref<4x102xf32, #tpu.memory_space<vmem>>, %arg9: memref<36x80xf32, #tpu.memory_space<vmem>>) attributes {dimension_semantics = [#tpu.dimension_semantics<parallel>], iteration_bounds = array<i64: 2>, scalar_prefetch = 0 : i64, scratch_operands = 2 : i64, tpu.core_type = #tpu.core_type<tc>, window_params = [{transform_indices = @transform_0, window_bounds = array<i64: 1, 4, 16, 16>}, {pipeline_mode = #tpu.pipeline_mode<synchronous>, transform_indices = @transform_1, window_bounds = array<i64: 8, 36>}, {pipeline_mode = #tpu.pipeline_mode<synchronous>, transform_indices = @transform_2, window_bounds = array<i64: 8, 1>}, {pipeline_mode = #tpu.pipeline_mode<synchronous>, transform_indices = @transform_3, window_bounds = array<i64: 16, 16>}, {pipeline_mode = #tpu.pipeline_mode<synchronous>, transform_indices = @transform_4, window_bounds = array<i64: 1, 80>}, {transform_indices = @transform_5, window_bounds = array<i64: 1, 8, 80>}, {transform_indices = @transform_6, window_bounds = array<i64: 1, 8, 2>}]} {
    %cst = arith.constant 0.000000e+00 : f32
    %0 = vector.broadcast %cst : f32 to vector<4x102xf32>
    %c0 = arith.constant 0 : index
    %c0_0 = arith.constant 0 : index
    %1 = vector.load %arg8[%c0, %c0_0] : memref<4x102xf32, #tpu.memory_space<vmem>>, vector<4x102xf32>
    tpu.vector_store %arg8[%c0, %c0_0], %0 {strides = array<i32>} : memref<4x102xf32, #tpu.memory_space<vmem>>, vector<4x102xf32>,
    %c0_1 = arith.constant 0 : index
    %c0_2 = arith.constant 0 : index
    %2 = vector.load %arg4[%c0_1, %c0_2] : memref<16x16xf32, #tpu.memory_space<vmem>>, vector<16x16xf32>
    %c0_3 = arith.constant 0 : index
    %c0_4 = arith.constant 0 : index
    %c0_5 = arith.constant 0 : index
    %c0_6 = arith.constant 0 : index
    %3 = vector.load %arg1[%c0_3, %c0_4, %c0_5, %c0_6] : memref<1x4x16x16xf32, #tpu.memory_space<vmem>>, vector<1x4x1x16xf32>
    %4 = vector.shape_cast %3 : vector<1x4x1x16xf32> to vector<4x16xf32>
    %c0_7 = arith.constant 0 : index
    %c0_8 = arith.constant 0 : index
    %c1 = arith.constant 1 : index
    %c0_9 = arith.constant 0 : index
    %5 = vector.load %arg1[%c0_7, %c0_8, %c1, %c0_9] : memref<1x4x16x16xf32, #tpu.memory_space<vmem>>, vector<1x4x1x16xf32>
    %6 = vector.shape_cast %5 : vector<1x4x1x16xf32> to vector<4x16xf32>
    %7 = arith.maximumf %4, %6 : vector<4x16xf32>
    %cst_10 = arith.constant dense<0.000000e+00> : vector<4x16xf32>
    %8 = tpu.matmul %7, %2, %cst_10 {dimension_numbers = #tpu.dot_dimension_numbers<[1], [0], [0], [1], [0, 0, 1, 1], [], []>} : vector<4x16xf32>, vector<16x16xf32>, vector<4x16xf32> -> vector<4x16xf32>
    %9 = vector.extract_strided_slice %8 {offsets = [0, 0], sizes = [4, 8], strides = [1, 1]} : vector<4x16xf32> to vector<4x8xf32>
    %10 = vector.extract_strided_slice %8 {offsets = [0, 8], sizes = [4, 8], strides = [1, 1]} : vector<4x16xf32> to vector<4x8xf32>
    %11 = arith.maximumf %9, %10 : vector<4x8xf32>
    %c0_11 = arith.constant 0 : index
    %c11 = arith.constant 11 : index
    %12 = vector.load %arg8[%c0_11, %c11] : memref<4x102xf32, #tpu.memory_space<vmem>>, vector<4x8xf32>
    tpu.vector_store %arg8[%c0_11, %c11], %11 {strides = array<i32>} : memref<4x102xf32, #tpu.memory_space<vmem>>, vector<4x8xf32>,
    %c0_12 = arith.constant 0 : index
    %c0_13 = arith.constant 0 : index
    %c2 = arith.constant 2 : index
    %c0_14 = arith.constant 0 : index
    %13 = vector.load %arg1[%c0_12, %c0_13, %c2, %c0_14] : memref<1x4x16x16xf32, #tpu.memory_space<vmem>>, vector<1x4x1x16xf32>
    %14 = vector.shape_cast %13 : vector<1x4x1x16xf32> to vector<4x16xf32>
    %c0_15 = arith.constant 0 : index
    %c0_16 = arith.constant 0 : index
    %c3 = arith.constant 3 : index
    %c0_17 = arith.constant 0 : index
    %15 = vector.load %arg1[%c0_15, %c0_16, %c3, %c0_17] : memref<1x4x16x16xf32, #tpu.memory_space<vmem>>, vector<1x4x1x16xf32>
    %16 = vector.shape_cast %15 : vector<1x4x1x16xf32> to vector<4x16xf32>
    %17 = arith.maximumf %14, %16 : vector<4x16xf32>
    %cst_18 = arith.constant dense<0.000000e+00> : vector<4x16xf32>
    %18 = tpu.matmul %17, %2, %cst_18 {dimension_numbers = #tpu.dot_dimension_numbers<[1], [0], [0], [1], [0, 0, 1, 1], [], []>} : vector<4x16xf32>, vector<16x16xf32>, vector<4x16xf32> -> vector<4x16xf32>
    %19 = vector.extract_strided_slice %18 {offsets = [0, 0], sizes = [4, 8], strides = [1, 1]} : vector<4x16xf32> to vector<4x8xf32>
    %20 = vector.extract_strided_slice %18 {offsets = [0, 8], sizes = [4, 8], strides = [1, 1]} : vector<4x16xf32> to vector<4x8xf32>
    %21 = arith.maximumf %19, %20 : vector<4x8xf32>
    %c0_19 = arith.constant 0 : index
    %c21 = arith.constant 21 : index
    %22 = vector.load %arg8[%c0_19, %c21] : memref<4x102xf32, #tpu.memory_space<vmem>>, vector<4x8xf32>
    tpu.vector_store %arg8[%c0_19, %c21], %21 {strides = array<i32>} : memref<4x102xf32, #tpu.memory_space<vmem>>, vector<4x8xf32>,
    %c0_20 = arith.constant 0 : index
    %c0_21 = arith.constant 0 : index
    %c4 = arith.constant 4 : index
    %c0_22 = arith.constant 0 : index
    %23 = vector.load %arg1[%c0_20, %c0_21, %c4, %c0_22] : memref<1x4x16x16xf32, #tpu.memory_space<vmem>>, vector<1x4x1x16xf32>
    %24 = vector.shape_cast %23 : vector<1x4x1x16xf32> to vector<4x16xf32>
    %c0_23 = arith.constant 0 : index
    %c0_24 = arith.constant 0 : index
    %c5 = arith.constant 5 : index
    %c0_25 = arith.constant 0 : index
    %25 = vector.load %arg1[%c0_23, %c0_24, %c5, %c0_25] : memref<1x4x16x16xf32, #tpu.memory_space<vmem>>, vector<1x4x1x16xf32>
    %26 = vector.shape_cast %25 : vector<1x4x1x16xf32> to vector<4x16xf32>
    %27 = arith.maximumf %24, %26 : vector<4x16xf32>
    %cst_26 = arith.constant dense<0.000000e+00> : vector<4x16xf32>
    %28 = tpu.matmul %27, %2, %cst_26 {dimension_numbers = #tpu.dot_dimension_numbers<[1], [0], [0], [1], [0, 0, 1, 1], [], []>} : vector<4x16xf32>, vector<16x16xf32>, vector<4x16xf32> -> vector<4x16xf32>
    %29 = vector.extract_strided_slice %28 {offsets = [0, 0], sizes = [4, 8], strides = [1, 1]} : vector<4x16xf32> to vector<4x8xf32>
    %30 = vector.extract_strided_slice %28 {offsets = [0, 8], sizes = [4, 8], strides = [1, 1]} : vector<4x16xf32> to vector<4x8xf32>
    %31 = arith.maximumf %29, %30 : vector<4x8xf32>
    %c0_27 = arith.constant 0 : index
    %c31 = arith.constant 31 : index
    %32 = vector.load %arg8[%c0_27, %c31] : memref<4x102xf32, #tpu.memory_space<vmem>>, vector<4x8xf32>
    tpu.vector_store %arg8[%c0_27, %c31], %31 {strides = array<i32>} : memref<4x102xf32, #tpu.memory_space<vmem>>, vector<4x8xf32>,
    %c0_28 = arith.constant 0 : index
    %c0_29 = arith.constant 0 : index
    %c6 = arith.constant 6 : index
    %c0_30 = arith.constant 0 : index
    %33 = vector.load %arg1[%c0_28, %c0_29, %c6, %c0_30] : memref<1x4x16x16xf32, #tpu.memory_space<vmem>>, vector<1x4x1x16xf32>
    %34 = vector.shape_cast %33 : vector<1x4x1x16xf32> to vector<4x16xf32>
    %c0_31 = arith.constant 0 : index
    %c0_32 = arith.constant 0 : index
    %c7 = arith.constant 7 : index
    %c0_33 = arith.constant 0 : index
    %35 = vector.load %arg1[%c0_31, %c0_32, %c7, %c0_33] : memref<1x4x16x16xf32, #tpu.memory_space<vmem>>, vector<1x4x1x16xf32>
    %36 = vector.shape_cast %35 : vector<1x4x1x16xf32> to vector<4x16xf32>
    %37 = arith.maximumf %34, %36 : vector<4x16xf32>
    %cst_34 = arith.constant dense<0.000000e+00> : vector<4x16xf32>
    %38 = tpu.matmul %37, %2, %cst_34 {dimension_numbers = #tpu.dot_dimension_numbers<[1], [0], [0], [1], [0, 0, 1, 1], [], []>} : vector<4x16xf32>, vector<16x16xf32>, vector<4x16xf32> -> vector<4x16xf32>
    %39 = vector.extract_strided_slice %38 {offsets = [0, 0], sizes = [4, 8], strides = [1, 1]} : vector<4x16xf32> to vector<4x8xf32>
    %40 = vector.extract_strided_slice %38 {offsets = [0, 8], sizes = [4, 8], strides = [1, 1]} : vector<4x16xf32> to vector<4x8xf32>
    %41 = arith.maximumf %39, %40 : vector<4x8xf32>
    %c0_35 = arith.constant 0 : index
    %c41 = arith.constant 41 : index
    %42 = vector.load %arg8[%c0_35, %c41] : memref<4x102xf32, #tpu.memory_space<vmem>>, vector<4x8xf32>
    tpu.vector_store %arg8[%c0_35, %c41], %41 {strides = array<i32>} : memref<4x102xf32, #tpu.memory_space<vmem>>, vector<4x8xf32>,
    %c0_36 = arith.constant 0 : index
    %c0_37 = arith.constant 0 : index
    %c8 = arith.constant 8 : index
    %c0_38 = arith.constant 0 : index
    %43 = vector.load %arg1[%c0_36, %c0_37, %c8, %c0_38] : memref<1x4x16x16xf32, #tpu.memory_space<vmem>>, vector<1x4x1x16xf32>
    %44 = vector.shape_cast %43 : vector<1x4x1x16xf32> to vector<4x16xf32>
    %c0_39 = arith.constant 0 : index
    %c0_40 = arith.constant 0 : index
    %c9 = arith.constant 9 : index
    %c0_41 = arith.constant 0 : index
    %45 = vector.load %arg1[%c0_39, %c0_40, %c9, %c0_41] : memref<1x4x16x16xf32, #tpu.memory_space<vmem>>, vector<1x4x1x16xf32>
    %46 = vector.shape_cast %45 : vector<1x4x1x16xf32> to vector<4x16xf32>
    %47 = arith.maximumf %44, %46 : vector<4x16xf32>
    %cst_42 = arith.constant dense<0.000000e+00> : vector<4x16xf32>
    %48 = tpu.matmul %47, %2, %cst_42 {dimension_numbers = #tpu.dot_dimension_numbers<[1], [0], [0], [1], [0, 0, 1, 1], [], []>} : vector<4x16xf32>, vector<16x16xf32>, vector<4x16xf32> -> vector<4x16xf32>
    %49 = vector.extract_strided_slice %48 {offsets = [0, 0], sizes = [4, 8], strides = [1, 1]} : vector<4x16xf32> to vector<4x8xf32>
    %50 = vector.extract_strided_slice %48 {offsets = [0, 8], sizes = [4, 8], strides = [1, 1]} : vector<4x16xf32> to vector<4x8xf32>
    %51 = arith.maximumf %49, %50 : vector<4x8xf32>
    %c0_43 = arith.constant 0 : index
    %c51 = arith.constant 51 : index
    %52 = vector.load %arg8[%c0_43, %c51] : memref<4x102xf32, #tpu.memory_space<vmem>>, vector<4x8xf32>
    tpu.vector_store %arg8[%c0_43, %c51], %51 {strides = array<i32>} : memref<4x102xf32, #tpu.memory_space<vmem>>, vector<4x8xf32>,
    %c0_44 = arith.constant 0 : index
    %c0_45 = arith.constant 0 : index
    %c10 = arith.constant 10 : index
    %c0_46 = arith.constant 0 : index
    %53 = vector.load %arg1[%c0_44, %c0_45, %c10, %c0_46] : memref<1x4x16x16xf32, #tpu.memory_space<vmem>>, vector<1x4x1x16xf32>
    %54 = vector.shape_cast %53 : vector<1x4x1x16xf32> to vector<4x16xf32>
    %c0_47 = arith.constant 0 : index
    %c0_48 = arith.constant 0 : index
    %c11_49 = arith.constant 11 : index
    %c0_50 = arith.constant 0 : index
    %55 = vector.load %arg1[%c0_47, %c0_48, %c11_49, %c0_50] : memref<1x4x16x16xf32, #tpu.memory_space<vmem>>, vector<1x4x1x16xf32>
    %56 = vector.shape_cast %55 : vector<1x4x1x16xf32> to vector<4x16xf32>
    %57 = arith.maximumf %54, %56 : vector<4x16xf32>
    %cst_51 = arith.constant dense<0.000000e+00> : vector<4x16xf32>
    %58 = tpu.matmul %57, %2, %cst_51 {dimension_numbers = #tpu.dot_dimension_numbers<[1], [0], [0], [1], [0, 0, 1, 1], [], []>} : vector<4x16xf32>, vector<16x16xf32>, vector<4x16xf32> -> vector<4x16xf32>
    %59 = vector.extract_strided_slice %58 {offsets = [0, 0], sizes = [4, 8], strides = [1, 1]} : vector<4x16xf32> to vector<4x8xf32>
    %60 = vector.extract_strided_slice %58 {offsets = [0, 8], sizes = [4, 8], strides = [1, 1]} : vector<4x16xf32> to vector<4x8xf32>
    %61 = arith.maximumf %59, %60 : vector<4x8xf32>
    %c0_52 = arith.constant 0 : index
    %c61 = arith.constant 61 : index
    %62 = vector.load %arg8[%c0_52, %c61] : memref<4x102xf32, #tpu.memory_space<vmem>>, vector<4x8xf32>
    tpu.vector_store %arg8[%c0_52, %c61], %61 {strides = array<i32>} : memref<4x102xf32, #tpu.memory_space<vmem>>, vector<4x8xf32>,
    %c0_53 = arith.constant 0 : index
    %c0_54 = arith.constant 0 : index
    %c12 = arith.constant 12 : index
    %c0_55 = arith.constant 0 : index
    %63 = vector.load %arg1[%c0_53, %c0_54, %c12, %c0_55] : memref<1x4x16x16xf32, #tpu.memory_space<vmem>>, vector<1x4x1x16xf32>
    %64 = vector.shape_cast %63 : vector<1x4x1x16xf32> to vector<4x16xf32>
    %c0_56 = arith.constant 0 : index
    %c0_57 = arith.constant 0 : index
    %c13 = arith.constant 13 : index
    %c0_58 = arith.constant 0 : index
    %65 = vector.load %arg1[%c0_56, %c0_57, %c13, %c0_58] : memref<1x4x16x16xf32, #tpu.memory_space<vmem>>, vector<1x4x1x16xf32>
    %66 = vector.shape_cast %65 : vector<1x4x1x16xf32> to vector<4x16xf32>
    %67 = arith.maximumf %64, %66 : vector<4x16xf32>
    %cst_59 = arith.constant dense<0.000000e+00> : vector<4x16xf32>
    %68 = tpu.matmul %67, %2, %cst_59 {dimension_numbers = #tpu.dot_dimension_numbers<[1], [0], [0], [1], [0, 0, 1, 1], [], []>} : vector<4x16xf32>, vector<16x16xf32>, vector<4x16xf32> -> vector<4x16xf32>
    %69 = vector.extract_strided_slice %68 {offsets = [0, 0], sizes = [4, 8], strides = [1, 1]} : vector<4x16xf32> to vector<4x8xf32>
    %70 = vector.extract_strided_slice %68 {offsets = [0, 8], sizes = [4, 8], strides = [1, 1]} : vector<4x16xf32> to vector<4x8xf32>
    %71 = arith.maximumf %69, %70 : vector<4x8xf32>
    %c0_60 = arith.constant 0 : index
    %c71 = arith.constant 71 : index
    %72 = vector.load %arg8[%c0_60, %c71] : memref<4x102xf32, #tpu.memory_space<vmem>>, vector<4x8xf32>
    tpu.vector_store %arg8[%c0_60, %c71], %71 {strides = array<i32>} : memref<4x102xf32, #tpu.memory_space<vmem>>, vector<4x8xf32>,
    %c0_61 = arith.constant 0 : index
    %c0_62 = arith.constant 0 : index
    %c14 = arith.constant 14 : index
    %c0_63 = arith.constant 0 : index
    %73 = vector.load %arg1[%c0_61, %c0_62, %c14, %c0_63] : memref<1x4x16x16xf32, #tpu.memory_space<vmem>>, vector<1x4x1x16xf32>
    %74 = vector.shape_cast %73 : vector<1x4x1x16xf32> to vector<4x16xf32>
    %c0_64 = arith.constant 0 : index
    %c0_65 = arith.constant 0 : index
    %c15 = arith.constant 15 : index
    %c0_66 = arith.constant 0 : index
    %75 = vector.load %arg1[%c0_64, %c0_65, %c15, %c0_66] : memref<1x4x16x16xf32, #tpu.memory_space<vmem>>, vector<1x4x1x16xf32>
    %76 = vector.shape_cast %75 : vector<1x4x1x16xf32> to vector<4x16xf32>
    %77 = arith.maximumf %74, %76 : vector<4x16xf32>
    %cst_67 = arith.constant dense<0.000000e+00> : vector<4x16xf32>
    %78 = tpu.matmul %77, %2, %cst_67 {dimension_numbers = #tpu.dot_dimension_numbers<[1], [0], [0], [1], [0, 0, 1, 1], [], []>} : vector<4x16xf32>, vector<16x16xf32>, vector<4x16xf32> -> vector<4x16xf32>
    %79 = vector.extract_strided_slice %78 {offsets = [0, 0], sizes = [4, 8], strides = [1, 1]} : vector<4x16xf32> to vector<4x8xf32>
    %80 = vector.extract_strided_slice %78 {offsets = [0, 8], sizes = [4, 8], strides = [1, 1]} : vector<4x16xf32> to vector<4x8xf32>
    %81 = arith.maximumf %79, %80 : vector<4x8xf32>
    %c0_68 = arith.constant 0 : index
    %c81 = arith.constant 81 : index
    %82 = vector.load %arg8[%c0_68, %c81] : memref<4x102xf32, #tpu.memory_space<vmem>>, vector<4x8xf32>
    tpu.vector_store %arg8[%c0_68, %c81], %81 {strides = array<i32>} : memref<4x102xf32, #tpu.memory_space<vmem>>, vector<4x8xf32>,
    %c0_69 = arith.constant 0 : index
    %c0_70 = arith.constant 0 : index
    %83 = vector.load %arg8[%c0_69, %c0_70] : memref<4x102xf32, #tpu.memory_space<vmem>>, vector<4x80xf32>
    %c0_71 = arith.constant 0 : index
    %c0_72 = arith.constant 0 : index
    %84 = vector.load %arg9[%c0_71, %c0_72] : memref<36x80xf32, #tpu.memory_space<vmem>>, vector<4x80xf32>
    tpu.vector_store %arg9[%c0_71, %c0_72], %83 {strides = array<i32>} : memref<36x80xf32, #tpu.memory_space<vmem>>, vector<4x80xf32>,
    %c0_73 = arith.constant 0 : index
    %c1_74 = arith.constant 1 : index
    %85 = vector.load %arg8[%c0_73, %c1_74] : memref<4x102xf32, #tpu.memory_space<vmem>>, vector<4x80xf32>
    %c4_75 = arith.constant 4 : index
    %c0_76 = arith.constant 0 : index
    %86 = vector.load %arg9[%c4_75, %c0_76] : memref<36x80xf32, #tpu.memory_space<vmem>>, vector<4x80xf32>
    tpu.vector_store %arg9[%c4_75, %c0_76], %85 {strides = array<i32>} : memref<36x80xf32, #tpu.memory_space<vmem>>, vector<4x80xf32>,
    %c0_77 = arith.constant 0 : index
    %c2_78 = arith.constant 2 : index
    %87 = vector.load %arg8[%c0_77, %c2_78] : memref<4x102xf32, #tpu.memory_space<vmem>>, vector<4x80xf32>
    %c8_79 = arith.constant 8 : index
    %c0_80 = arith.constant 0 : index
    %88 = vector.load %arg9[%c8_79, %c0_80] : memref<36x80xf32, #tpu.memory_space<vmem>>, vector<4x80xf32>
    tpu.vector_store %arg9[%c8_79, %c0_80], %87 {strides = array<i32>} : memref<36x80xf32, #tpu.memory_space<vmem>>, vector<4x80xf32>,
    %c0_81 = arith.constant 0 : index
    %c10_82 = arith.constant 10 : index
    %89 = vector.load %arg8[%c0_81, %c10_82] : memref<4x102xf32, #tpu.memory_space<vmem>>, vector<4x80xf32>
    %c12_83 = arith.constant 12 : index
    %c0_84 = arith.constant 0 : index
    %90 = vector.load %arg9[%c12_83, %c0_84] : memref<36x80xf32, #tpu.memory_space<vmem>>, vector<4x80xf32>
    tpu.vector_store %arg9[%c12_83, %c0_84], %89 {strides = array<i32>} : memref<36x80xf32, #tpu.memory_space<vmem>>, vector<4x80xf32>,
    %c0_85 = arith.constant 0 : index
    %c11_86 = arith.constant 11 : index
    %91 = vector.load %arg8[%c0_85, %c11_86] : memref<4x102xf32, #tpu.memory_space<vmem>>, vector<4x80xf32>
    %c16 = arith.constant 16 : index
    %c0_87 = arith.constant 0 : index
    %92 = vector.load %arg9[%c16, %c0_87] : memref<36x80xf32, #tpu.memory_space<vmem>>, vector<4x80xf32>
    tpu.vector_store %arg9[%c16, %c0_87], %91 {strides = array<i32>} : memref<36x80xf32, #tpu.memory_space<vmem>>, vector<4x80xf32>,
    %c0_88 = arith.constant 0 : index
    %c12_89 = arith.constant 12 : index
    %93 = vector.load %arg8[%c0_88, %c12_89] : memref<4x102xf32, #tpu.memory_space<vmem>>, vector<4x80xf32>
    %c20 = arith.constant 20 : index
    %c0_90 = arith.constant 0 : index
    %94 = vector.load %arg9[%c20, %c0_90] : memref<36x80xf32, #tpu.memory_space<vmem>>, vector<4x80xf32>
    tpu.vector_store %arg9[%c20, %c0_90], %93 {strides = array<i32>} : memref<36x80xf32, #tpu.memory_space<vmem>>, vector<4x80xf32>,
    %c0_91 = arith.constant 0 : index
    %c20_92 = arith.constant 20 : index
    %95 = vector.load %arg8[%c0_91, %c20_92] : memref<4x102xf32, #tpu.memory_space<vmem>>, vector<4x80xf32>
    %c24 = arith.constant 24 : index
    %c0_93 = arith.constant 0 : index
    %96 = vector.load %arg9[%c24, %c0_93] : memref<36x80xf32, #tpu.memory_space<vmem>>, vector<4x80xf32>
    tpu.vector_store %arg9[%c24, %c0_93], %95 {strides = array<i32>} : memref<36x80xf32, #tpu.memory_space<vmem>>, vector<4x80xf32>,
    %c0_94 = arith.constant 0 : index
    %c21_95 = arith.constant 21 : index
    %97 = vector.load %arg8[%c0_94, %c21_95] : memref<4x102xf32, #tpu.memory_space<vmem>>, vector<4x80xf32>
    %c28 = arith.constant 28 : index
    %c0_96 = arith.constant 0 : index
    %98 = vector.load %arg9[%c28, %c0_96] : memref<36x80xf32, #tpu.memory_space<vmem>>, vector<4x80xf32>
    tpu.vector_store %arg9[%c28, %c0_96], %97 {strides = array<i32>} : memref<36x80xf32, #tpu.memory_space<vmem>>, vector<4x80xf32>,
    %c0_97 = arith.constant 0 : index
    %c22 = arith.constant 22 : index
    %99 = vector.load %arg8[%c0_97, %c22] : memref<4x102xf32, #tpu.memory_space<vmem>>, vector<4x80xf32>
    %c32 = arith.constant 32 : index
    %c0_98 = arith.constant 0 : index
    %100 = vector.load %arg9[%c32, %c0_98] : memref<36x80xf32, #tpu.memory_space<vmem>>, vector<4x80xf32>
    tpu.vector_store %arg9[%c32, %c0_98], %99 {strides = array<i32>} : memref<36x80xf32, #tpu.memory_space<vmem>>, vector<4x80xf32>,
    %c0_99 = arith.constant 0 : index
    %c0_100 = arith.constant 0 : index
    %101 = vector.load %arg2[%c0_99, %c0_100] : memref<8x36xf32, #tpu.memory_space<vmem>>, vector<8x36xf32>
    %c0_101 = arith.constant 0 : index
    %c0_102 = arith.constant 0 : index
    %102 = vector.load %arg9[%c0_101, %c0_102] : memref<36x80xf32, #tpu.memory_space<vmem>>, vector<36x80xf32>
    %cst_103 = arith.constant dense<0.000000e+00> : vector<8x80xf32>
    %103 = tpu.matmul %101, %102, %cst_103 {dimension_numbers = #tpu.dot_dimension_numbers<[1], [0], [0], [1], [0, 0, 1, 1], [], []>} : vector<8x36xf32>, vector<36x80xf32>, vector<8x80xf32> -> vector<8x80xf32>
    %c0_104 = arith.constant 0 : index
    %c0_105 = arith.constant 0 : index
    %104 = vector.load %arg3[%c0_104, %c0_105] : memref<8x1xf32, #tpu.memory_space<vmem>>, vector<8x1xf32>
    %105 = vector.broadcast %104 : vector<8x1xf32> to vector<8x80xf32>
    %106 = arith.addf %103, %105 : vector<8x80xf32>
    %c0_106 = arith.constant 0 : index
    %c0_107 = arith.constant 0 : index
    %107 = vector.load %arg5[%c0_106, %c0_107] : memref<1x80xf32, #tpu.memory_space<vmem>>, vector<1x80xf32>
    %108 = vector.broadcast %107 : vector<1x80xf32> to vector<8x80xf32>
    %109 = arith.mulf %106, %108 : vector<8x80xf32>
    %c0_108 = arith.constant 0 : index
    %c0_109 = arith.constant 0 : index
    %c0_110 = arith.constant 0 : index
    %110 = vector.load %arg6[%c0_108, %c0_109, %c0_110] : memref<1x8x80xf32, #tpu.memory_space<vmem>>, vector<1x8x80xf32>
    %111 = vector.shape_cast %110 : vector<1x8x80xf32> to vector<8x80xf32>
    %112 = vector.shape_cast %109 : vector<8x80xf32> to vector<1x8x80xf32>
    tpu.vector_store %arg6[%c0_108, %c0_109, %c0_110], %112 {strides = array<i32>} : memref<1x8x80xf32, #tpu.memory_space<vmem>>, vector<1x8x80xf32>,
    %cst_111 = arith.constant dense<0.000000e+00> : vector<8xf32>
    %113 = vector.multi_reduction <add>, %109, %cst_111 [1] : vector<8x80xf32> to vector<8xf32>
    %114 = vector.shape_cast %113 : vector<8xf32> to vector<8x1xf32>
    %c0_112 = arith.constant 0 : index
    %c0_113 = arith.constant 0 : index
    %c0_114 = arith.constant 0 : index
    %115 = vector.load %arg7[%c0_112, %c0_113, %c0_114] : memref<1x8x2xf32, #tpu.memory_space<vmem>>, vector<1x8x1xf32>
    %116 = vector.shape_cast %115 : vector<1x8x1xf32> to vector<8x1xf32>
    %117 = vector.shape_cast %114 : vector<8x1xf32> to vector<1x8x1xf32>
    tpu.vector_store %arg7[%c0_112, %c0_113, %c0_114], %117 {strides = array<i32>} : memref<1x8x2xf32, #tpu.memory_space<vmem>>, vector<1x8x1xf32>,
    %118 = arith.mulf %109, %109 : vector<8x80xf32>
    %cst_115 = arith.constant dense<0.000000e+00> : vector<8xf32>
    %119 = vector.multi_reduction <add>, %118, %cst_115 [1] : vector<8x80xf32> to vector<8xf32>
    %120 = vector.shape_cast %119 : vector<8xf32> to vector<8x1xf32>
    %c0_116 = arith.constant 0 : index
    %c0_117 = arith.constant 0 : index
    %c1_118 = arith.constant 1 : index
    %121 = vector.load %arg7[%c0_116, %c0_117, %c1_118] : memref<1x8x2xf32, #tpu.memory_space<vmem>>, vector<1x8x1xf32>
    %122 = vector.shape_cast %121 : vector<1x8x1xf32> to vector<8x1xf32>
    %123 = vector.shape_cast %120 : vector<8x1xf32> to vector<1x8x1xf32>
    tpu.vector_store %arg7[%c0_116, %c0_117, %c1_118], %123 {strides = array<i32>} : memref<1x8x2xf32, #tpu.memory_space<vmem>>, vector<1x8x1xf32>,
    return
  }
  func.func @transform_0(%arg0: i32) -> (i32, i32, i32, i32) {
    %c0_i32 = arith.constant 0 : i32
    %c0_i32_0 = arith.constant 0 : i32
    %c0_i32_1 = arith.constant 0 : i32
    %c0_i32_2 = arith.constant 0 : i32
    return %arg0, %c0_i32, %c0_i32_0, %c0_i32_1 : i32, i32, i32, i32
  }
  func.func @transform_1(%arg0: i32) -> (i32, i32) {
    %c0_i32 = arith.constant 0 : i32
    %c0_i32_0 = arith.constant 0 : i32
    %c0_i32_1 = arith.constant 0 : i32
    return %c0_i32, %c0_i32_0 : i32, i32
  }
  func.func @transform_2(%arg0: i32) -> (i32, i32) {
    %c0_i32 = arith.constant 0 : i32
    %c0_i32_0 = arith.constant 0 : i32
    %c0_i32_1 = arith.constant 0 : i32
    return %c0_i32, %c0_i32_0 : i32, i32
  }
  func.func @transform_3(%arg0: i32) -> (i32, i32) {
    %c0_i32 = arith.constant 0 : i32
    %c0_i32_0 = arith.constant 0 : i32
    %c0_i32_1 = arith.constant 0 : i32
    return %c0_i32, %c0_i32_0 : i32, i32
  }
  func.func @transform_4(%arg0: i32) -> (i32, i32) {
    %c0_i32 = arith.constant 0 : i32
    %c0_i32_0 = arith.constant 0 : i32
    %c0_i32_1 = arith.constant 0 : i32
    return %c0_i32, %c0_i32_0 : i32, i32
  }
  func.func @transform_5(%arg0: i32) -> (i32, i32, i32) {
    %c0_i32 = arith.constant 0 : i32
    %c0_i32_0 = arith.constant 0 : i32
    %c0_i32_1 = arith.constant 0 : i32
    return %arg0, %c0_i32, %c0_i32_0 : i32, i32, i32
  }
  func.func @transform_6(%arg0: i32) -> (i32, i32, i32) {
    %c0_i32 = arith.constant 0 : i32
    %c0_i32_0 = arith.constant 0 : i32
    %c0_i32_1 = arith.constant 0 : i32
    return %arg0, %c0_i32, %c0_i32_0 : i32, i32, i32
  }
}

module attributes {stable_mosaic.version = 11 : i64} {
  func.func @_bnrelu_unpad_kernel(%arg0: i32, %arg1: memref<1x8x80xf32, #tpu.memory_space<vmem>>, %arg2: memref<8x1xf32, #tpu.memory_space<vmem>>, %arg3: memref<8x1xf32, #tpu.memory_space<vmem>>, %arg4: memref<1x8x8x8xf32, #tpu.memory_space<vmem>>) attributes {dimension_semantics = [#tpu.dimension_semantics<parallel>], iteration_bounds = array<i64: 2>, scalar_prefetch = 0 : i64, scratch_operands = 0 : i64, tpu.core_type = #tpu.core_type<tc>, window_params = [{transform_indices = @transform_0, window_bounds = array<i64: 1, 8, 80>}, {pipeline_mode = #tpu.pipeline_mode<synchronous>, transform_indices = @transform_1, window_bounds = array<i64: 8, 1>}, {pipeline_mode = #tpu.pipeline_mode<synchronous>, transform_indices = @transform_2, window_bounds = array<i64: 8, 1>}, {transform_indices = @transform_3, window_bounds = array<i64: 1, 8, 8, 8>}]} {
    %c0 = arith.constant 0 : index
    %c0_0 = arith.constant 0 : index
    %c0_1 = arith.constant 0 : index
    %0 = vector.load %arg1[%c0, %c0_0, %c0_1] : memref<1x8x80xf32, #tpu.memory_space<vmem>>, vector<1x8x80xf32>
    %1 = vector.shape_cast %0 : vector<1x8x80xf32> to vector<8x80xf32>
    %c0_2 = arith.constant 0 : index
    %c0_3 = arith.constant 0 : index
    %2 = vector.load %arg2[%c0_2, %c0_3] : memref<8x1xf32, #tpu.memory_space<vmem>>, vector<8x1xf32>
    %3 = vector.broadcast %2 : vector<8x1xf32> to vector<8x80xf32>
    %4 = arith.mulf %1, %3 : vector<8x80xf32>
    %c0_4 = arith.constant 0 : index
    %c0_5 = arith.constant 0 : index
    %5 = vector.load %arg3[%c0_4, %c0_5] : memref<8x1xf32, #tpu.memory_space<vmem>>, vector<8x1xf32>
    %6 = vector.broadcast %5 : vector<8x1xf32> to vector<8x80xf32>
    %7 = arith.addf %4, %6 : vector<8x80xf32>
    %cst = arith.constant 0.000000e+00 : f32
    %8 = vector.broadcast %cst : f32 to vector<8x80xf32>
    %9 = arith.maximumf %7, %8 : vector<8x80xf32>
    %10 = vector.extract_strided_slice %9 {offsets = [0, 0], sizes = [8, 8], strides = [1, 1]} : vector<8x80xf32> to vector<8x8xf32>
    %c0_6 = arith.constant 0 : index
    %c0_7 = arith.constant 0 : index
    %c0_8 = arith.constant 0 : index
    %c0_9 = arith.constant 0 : index
    %11 = vector.load %arg4[%c0_6, %c0_7, %c0_8, %c0_9] : memref<1x8x8x8xf32, #tpu.memory_space<vmem>>, vector<1x8x1x8xf32>
    %12 = vector.shape_cast %11 : vector<1x8x1x8xf32> to vector<8x8xf32>
    %13 = vector.shape_cast %10 : vector<8x8xf32> to vector<1x8x1x8xf32>
    tpu.vector_store %arg4[%c0_6, %c0_7, %c0_8, %c0_9], %13 {strides = array<i32>} : memref<1x8x8x8xf32, #tpu.memory_space<vmem>>, vector<1x8x1x8xf32>,
    %14 = vector.extract_strided_slice %9 {offsets = [0, 10], sizes = [8, 8], strides = [1, 1]} : vector<8x80xf32> to vector<8x8xf32>
    %c0_10 = arith.constant 0 : index
    %c0_11 = arith.constant 0 : index
    %c1 = arith.constant 1 : index
    %c0_12 = arith.constant 0 : index
    %15 = vector.load %arg4[%c0_10, %c0_11, %c1, %c0_12] : memref<1x8x8x8xf32, #tpu.memory_space<vmem>>, vector<1x8x1x8xf32>
    %16 = vector.shape_cast %15 : vector<1x8x1x8xf32> to vector<8x8xf32>
    %17 = vector.shape_cast %14 : vector<8x8xf32> to vector<1x8x1x8xf32>
    tpu.vector_store %arg4[%c0_10, %c0_11, %c1, %c0_12], %17 {strides = array<i32>} : memref<1x8x8x8xf32, #tpu.memory_space<vmem>>, vector<1x8x1x8xf32>,
    %18 = vector.extract_strided_slice %9 {offsets = [0, 20], sizes = [8, 8], strides = [1, 1]} : vector<8x80xf32> to vector<8x8xf32>
    %c0_13 = arith.constant 0 : index
    %c0_14 = arith.constant 0 : index
    %c2 = arith.constant 2 : index
    %c0_15 = arith.constant 0 : index
    %19 = vector.load %arg4[%c0_13, %c0_14, %c2, %c0_15] : memref<1x8x8x8xf32, #tpu.memory_space<vmem>>, vector<1x8x1x8xf32>
    %20 = vector.shape_cast %19 : vector<1x8x1x8xf32> to vector<8x8xf32>
    %21 = vector.shape_cast %18 : vector<8x8xf32> to vector<1x8x1x8xf32>
    tpu.vector_store %arg4[%c0_13, %c0_14, %c2, %c0_15], %21 {strides = array<i32>} : memref<1x8x8x8xf32, #tpu.memory_space<vmem>>, vector<1x8x1x8xf32>,
    %22 = vector.extract_strided_slice %9 {offsets = [0, 30], sizes = [8, 8], strides = [1, 1]} : vector<8x80xf32> to vector<8x8xf32>
    %c0_16 = arith.constant 0 : index
    %c0_17 = arith.constant 0 : index
    %c3 = arith.constant 3 : index
    %c0_18 = arith.constant 0 : index
    %23 = vector.load %arg4[%c0_16, %c0_17, %c3, %c0_18] : memref<1x8x8x8xf32, #tpu.memory_space<vmem>>, vector<1x8x1x8xf32>
    %24 = vector.shape_cast %23 : vector<1x8x1x8xf32> to vector<8x8xf32>
    %25 = vector.shape_cast %22 : vector<8x8xf32> to vector<1x8x1x8xf32>
    tpu.vector_store %arg4[%c0_16, %c0_17, %c3, %c0_18], %25 {strides = array<i32>} : memref<1x8x8x8xf32, #tpu.memory_space<vmem>>, vector<1x8x1x8xf32>,
    %26 = vector.extract_strided_slice %9 {offsets = [0, 40], sizes = [8, 8], strides = [1, 1]} : vector<8x80xf32> to vector<8x8xf32>
    %c0_19 = arith.constant 0 : index
    %c0_20 = arith.constant 0 : index
    %c4 = arith.constant 4 : index
    %c0_21 = arith.constant 0 : index
    %27 = vector.load %arg4[%c0_19, %c0_20, %c4, %c0_21] : memref<1x8x8x8xf32, #tpu.memory_space<vmem>>, vector<1x8x1x8xf32>
    %28 = vector.shape_cast %27 : vector<1x8x1x8xf32> to vector<8x8xf32>
    %29 = vector.shape_cast %26 : vector<8x8xf32> to vector<1x8x1x8xf32>
    tpu.vector_store %arg4[%c0_19, %c0_20, %c4, %c0_21], %29 {strides = array<i32>} : memref<1x8x8x8xf32, #tpu.memory_space<vmem>>, vector<1x8x1x8xf32>,
    %30 = vector.extract_strided_slice %9 {offsets = [0, 50], sizes = [8, 8], strides = [1, 1]} : vector<8x80xf32> to vector<8x8xf32>
    %c0_22 = arith.constant 0 : index
    %c0_23 = arith.constant 0 : index
    %c5 = arith.constant 5 : index
    %c0_24 = arith.constant 0 : index
    %31 = vector.load %arg4[%c0_22, %c0_23, %c5, %c0_24] : memref<1x8x8x8xf32, #tpu.memory_space<vmem>>, vector<1x8x1x8xf32>
    %32 = vector.shape_cast %31 : vector<1x8x1x8xf32> to vector<8x8xf32>
    %33 = vector.shape_cast %30 : vector<8x8xf32> to vector<1x8x1x8xf32>
    tpu.vector_store %arg4[%c0_22, %c0_23, %c5, %c0_24], %33 {strides = array<i32>} : memref<1x8x8x8xf32, #tpu.memory_space<vmem>>, vector<1x8x1x8xf32>,
    %34 = vector.extract_strided_slice %9 {offsets = [0, 60], sizes = [8, 8], strides = [1, 1]} : vector<8x80xf32> to vector<8x8xf32>
    %c0_25 = arith.constant 0 : index
    %c0_26 = arith.constant 0 : index
    %c6 = arith.constant 6 : index
    %c0_27 = arith.constant 0 : index
    %35 = vector.load %arg4[%c0_25, %c0_26, %c6, %c0_27] : memref<1x8x8x8xf32, #tpu.memory_space<vmem>>, vector<1x8x1x8xf32>
    %36 = vector.shape_cast %35 : vector<1x8x1x8xf32> to vector<8x8xf32>
    %37 = vector.shape_cast %34 : vector<8x8xf32> to vector<1x8x1x8xf32>
    tpu.vector_store %arg4[%c0_25, %c0_26, %c6, %c0_27], %37 {strides = array<i32>} : memref<1x8x8x8xf32, #tpu.memory_space<vmem>>, vector<1x8x1x8xf32>,
    %38 = vector.extract_strided_slice %9 {offsets = [0, 70], sizes = [8, 8], strides = [1, 1]} : vector<8x80xf32> to vector<8x8xf32>
    %c0_28 = arith.constant 0 : index
    %c0_29 = arith.constant 0 : index
    %c7 = arith.constant 7 : index
    %c0_30 = arith.constant 0 : index
    %39 = vector.load %arg4[%c0_28, %c0_29, %c7, %c0_30] : memref<1x8x8x8xf32, #tpu.memory_space<vmem>>, vector<1x8x1x8xf32>
    %40 = vector.shape_cast %39 : vector<1x8x1x8xf32> to vector<8x8xf32>
    %41 = vector.shape_cast %38 : vector<8x8xf32> to vector<1x8x1x8xf32>
    tpu.vector_store %arg4[%c0_28, %c0_29, %c7, %c0_30], %41 {strides = array<i32>} : memref<1x8x8x8xf32, #tpu.memory_space<vmem>>, vector<1x8x1x8xf32>,
    return
  }
  func.func @transform_0(%arg0: i32) -> (i32, i32, i32) {
    %c0_i32 = arith.constant 0 : i32
    %c0_i32_0 = arith.constant 0 : i32
    %c0_i32_1 = arith.constant 0 : i32
    return %arg0, %c0_i32, %c0_i32_0 : i32, i32, i32
  }
  func.func @transform_1(%arg0: i32) -> (i32, i32) {
    %c0_i32 = arith.constant 0 : i32
    %c0_i32_0 = arith.constant 0 : i32
    %c0_i32_1 = arith.constant 0 : i32
    return %c0_i32, %c0_i32_0 : i32, i32
  }
  func.func @transform_2(%arg0: i32) -> (i32, i32) {
    %c0_i32 = arith.constant 0 : i32
    %c0_i32_0 = arith.constant 0 : i32
    %c0_i32_1 = arith.constant 0 : i32
    return %c0_i32, %c0_i32_0 : i32, i32
  }
  func.func @transform_3(%arg0: i32) -> (i32, i32, i32, i32) {
    %c0_i32 = arith.constant 0 : i32
    %c0_i32_0 = arith.constant 0 : i32
    %c0_i32_1 = arith.constant 0 : i32
    %c0_i32_2 = arith.constant 0 : i32
    return %arg0, %c0_i32, %c0_i32_0, %c0_i32_1 : i32, i32, i32, i32
  }
}

</mosaic_0001>

<bundles_post_ra>
// kernel: down_forward.4
= control target key start
LH: loop header
LB: loop body
LE: loop exit
PB: predicated region body
PF: predicated region fallthrough
CT: control target
= control target key end

     0   :  { %s599_s24 = smov 0   ;;  %s654_s0 = inlined_call_operand.vmem [shape: f32[2,8,80], index: 0, kind: input, shape index: {}]   ;;  %s655_s1 = inlined_call_operand.vmem [shape: f32[8,72], index: 1, kind: input, shape index: {}]   ;;  %s656_s2 = inlined_call_operand.vmem [shape: f32[8,1], index: 2, kind: input, shape index: {}]   ;;  %s657_s3 = inlined_call_operand.vmem [shape: f32[8,1], index: 3, kind: input, shape index: {}]   ;;  %s658_s4 = inlined_call_operand.vmem [shape: f32[8,1], index: 4, kind: input, shape index: {}]   ;;  %s659_s5 = inlined_call_operand.vmem [shape: f32[1,80], index: 5, kind: input, shape index: {}]   ;;  %s660_s6 = inlined_call_operand.vmem [shape: f32[2,8,80], index: 6, kind: output, shape index: {0}]   ;;  %s661_s7 = inlined_call_operand.vmem [shape: f32[2,8,2], index: 7, kind: output, shape index: {1}]  }
   0x1 LB: > { %s506_s25 = sadd.s32 4294967295, %s546_s24   ;;  %p510_p0 = scmp.ge.s32.totalorder %s546_s24, 1  ;;  %s546_s24 = sphi %s599_s24, %s18_s24  }
   0x2   : > { %p239_p1 = scmp.lt.s32.totalorder %s546_s24, 3 }
   0x4   : > { %p240_p2 = pnand %p510_p0, %p239_p1 }
   0x5   : > { %p273_p3 = scmp.lt.s32.totalorder (!%p240_p2), %s506_s25, 1  ;;  %s550_s13 = smov (!%p240_p2), 11  }
   0x6   : > { %243 = sbr.rel (%p240_p2) target bundleno = 657 (0x291), region = 44  ;;  %s551_s14 = smov (!%p240_p2), 106  }
   0x7   : > { %s552_s15 = smov (!%p240_p2), 107   ;;  %s553_s16 = smov (!%p240_p2), 116  }
   0x8   : > { %s554_s17 = smov (!%p240_p2), 108   ;;  %s555_s18 = smov (!%p240_p2), 117  }
   0x9   : > { %s556_s19 = smov (!%p240_p2), 126   ;;  %s557_s20 = smov (!%p240_p2), 118  }
   0xa   : > { %s558_s21 = smov (!%p240_p2), 127  }
   0xb   : > { %v286_v0 = vld [vmem:[%s657_s3] sm:$0xff]  ;;  %v548_v1 = vmov 0   ;;  %vm306_vm0 = vcmask 834560   ;;  %v549_v3 = vmov 0.0   ;;  %s663_s25 = smov (!%p273_p3, %s506_s25), 1  ;;  %vm312_vm1 = vcmask 744536  }
   0xc   : > { %536 = vset.pattern.permute.xlu0 %v548_v1  ;;  %537 = vset.pattern.permute.xlu2 %v548_v1  ;;  %v293_v2 = vld [vmem:[%s658_s4] sm:$0xff]  ;;  %307 = vst.msk [vmem:[#allocation2] sm:$0xff] %vm306_vm0, %v549_v3  ;;  %s613_s30 = sshll.u32 %s663_s25, 3  ;;  %vm315_vm2 = vcmask 654336   ;;  %vm381_vm3 = vcmask 588800   ;;  %vm414_vm4 = vcmask 7168  }
   0xd   : > { %289 = vperm.xlu0 %536, %v286_v0   ;;  %s276_s10 = scalar_lea.vmem %s654_s0, %s613_s30  ;;  %v538_v9 = vld [vmem:[%s659_s5] ss:$0 sm:$0xff]  ;;  %s280_s9 = scalar_lea.vmem %s660_s6, %s613_s30  ;;  %vm420_vm5 = vcmask 15368  }
   0xe   : > { %v285_v5 = vld [vmem:[%s276_s10] sm:$0xff]  ;;  %s284_s12 = scalar_lea.vmem %s661_s7, %s613_s30 }
   0xf   : > { %v375_v17 = vld [vmem:[%s656_s2] sm:$0xff] }
  0x10   : > { %v365_v31 = vld [vmem:[%s655_s1] sm:$0xff] }
  0x11   : > { %v539_v34 = vld [vmem:[%s659_s5] ss:$0 sm:$0xff] }
  0x15   : > { %296 = vperm.xlu0 %536, %v293_v2  }
  0x7f   : > { %v290_v4 = vpop.permute.xlu0 %289 }
  0x80   : > { %v292_v6 = vmul.f32 %v290_v4, %v285_v5 }
  0x87   : > { %v297_v7 = vpop.permute.xlu0 %296 }
  0x88   : > { %v299_v8 = vadd.f32 %v297_v7, %v292_v6 }
  0x8a   : > { %v300_v10 = vmax.f32 %v299_v8, 0.0 }
  0x8c   : > { %v305_v11 = vmul.f32 %v538_v9, %v300_v10 }
  0x8e   : > { %309 = vrot.lane.b32.xlu1 %v305_v11, %s550_s13 }
 0x100   : > { %v310_v12 = vpop.permute.xlu1 %309 }
 0x101   : > { %313 = vst.msk [vmem:[#allocation2] sm:$0xff] %vm312_vm1, %v310_v12 }
 0x108   : > { %v359_v13 = vld [vmem:[#allocation2] sm:$0xff] }
 0x109   : > { %361 = vrot.lane.b32.xlu1 %v359_v13, %s551_s14  ;;  %355 = vrot.lane.b32.xlu2 %v359_v13, %s552_s15  ;;  %316 = vst.msk [vmem:[#allocation3] sm:$0xff] %vm315_vm2, %v359_v13 }
 0x10a   : > { %343 = vrot.lane.b32.xlu0 %v359_v13, %s553_s16 }
 0x110   : > { %v366_v32 = vld [vmem:[#allocation3] sm:$0xff] }
 0x111   : > { %349 = vrot.lane.b32.xlu2 %v359_v13, %s554_s17  ;;  %337 = vrot.lane.b32.xlu1 %v359_v13, %s555_s18 }
 0x112   : > { %325 = vrot.lane.b32.xlu0 %v359_v13, %s556_s19 }
 0x119   : > { %331 = vrot.lane.b32.xlu2 %v359_v13, %s557_s20  ;;  %319 = vrot.lane.b32.xlu1 %v359_v13, %s558_s21 }
 0x121   : > { %378 = vperm.xlu2 %537, %v375_v17  }
 0x163   : > { %v356_v14 = vpop.permute.xlu2 %355 }
 0x164   : > { %358 = vst.msk [vmem:[#allocation3 + $0x38] sm:$0xff] %vm315_vm2, %v356_v14 }
 0x16b   : > { %v350_v15 = vpop.permute.xlu2 %349  ;;  %v373_v23 = vld [vmem:[#allocation3 + $0x38] sm:$0xff] }
 0x16c   : > { %352 = vst.msk [vmem:[#allocation3 + $0x30] sm:$0xff] %vm315_vm2, %v350_v15 }
 0x173   : > { %v332_v16 = vpop.permute.xlu2 %331  ;;  %v372_v24 = vld [vmem:[#allocation3 + $0x30] sm:$0xff] }
 0x174   : > { %334 = vst.msk [vmem:[#allocation3 + $0x18] sm:$0xff] %vm315_vm2, %v332_v16 }
 0x17b   : > { %v362_v18 = vpop.permute.xlu1 %361  ;;  %v369_v28 = vld [vmem:[#allocation3 + $0x18] sm:$0xff]  ;;  %v379_v33 = vpop.permute.xlu2 %378 }
 0x17c   : > { %364 = vst.msk [vmem:[#allocation3 + $0x40] sm:$0xff] %vm315_vm2, %v362_v18  ;;  %v344_v19 = vpop.permute.xlu0 %343 }
 0x17d   : > { %346 = vst.msk [vmem:[#allocation3 + $0x28] sm:$0xff] %vm315_vm2, %v344_v19 }
 0x183   : > { %v338_v20 = vpop.permute.xlu1 %337  ;;  %v374_v21 = vld [vmem:[#allocation3 + $0x40] sm:$0xff] }
 0x184   : > { %340 = vst.msk [vmem:[#allocation3 + $0x20] sm:$0xff] %vm315_vm2, %v338_v20  ;;  %v326_v22 = vpop.permute.xlu0 %325  ;;  %392 = vmatpush.msra.mxu0 %v374_v21  ;;  %v371_v25 = vld [vmem:[#allocation3 + $0x28] sm:$0xff] }
 0x185   : > { %328 = vst.msk [vmem:[#allocation3 + $0x10] sm:$0xff] %vm315_vm2, %v326_v22 }
 0x186   : > { %393 = vmatpush.msra.mxu0 %v373_v23 }
 0x188   : > { %394 = vmatpush.msra.mxu0 %v372_v24 }
 0x18a   : > { %395 = vmatpush.msra.mxu0 %v371_v25 }
 0x18b   : > { %v320_v26 = vpop.permute.xlu1 %319  ;;  %v370_v27 = vld [vmem:[#allocation3 + $0x20] sm:$0xff] }
 0x18c   : > { %322 = vst.msk [vmem:[#allocation3 + $0x8] sm:$0xff] %vm315_vm2, %v320_v26  ;;  %396 = vmatpush.msra.mxu0 %v370_v27  ;;  %v368_v29 = vld [vmem:[#allocation3 + $0x10] sm:$0xff] }
 0x18e   : > { %397 = vmatpush.msra.mxu0 %v369_v28 }
 0x190   : > { %398 = vmatpush.msra.mxu0 %v368_v29 }
 0x193   : > { %v367_v30 = vld [vmem:[#allocation3 + $0x8] sm:$0xff] }
 0x194   : > { %399 = vmatpush.msra.mxu0 %v367_v30 }
 0x196   : > { %400 = vmatpush.msra.mxu0 %v366_v32 }
 0x197   : > { %514 = vmatmul.msk.f32.vlgmr.msra.gmra.mxu0 %vm381_vm3, %v365_v31 }
 0x214   : > { %v402_v35 = vpop.f32.mrf.mxu0 }
 0x215   : > { %v403_v36 = vadd.f32 %v402_v35, %v379_v33 }
 0x217   : > { %v409_v37 = vmul.f32 %v539_v34, %v403_v36 }
 0x219   : > { %410 = vst.msk [vmem:[%s280_s9] sm:$0xff] %vm315_vm2, %v409_v37  ;;  %v411_v38 = vsel %vm315_vm2, %v409_v37, 0.0  ;;  %v416_v39 = vmul.f32 %v409_v37, %v409_v37 }
 0x21a   : > { %412 = vadd.xlane.f32.xlu0 %v411_v38 }
 0x21b   : > { %v417_v40 = vsel %vm315_vm2, %v416_v39, 0.0 }
 0x21c   : > { %418 = vadd.xlane.f32.xlu1 %v417_v40 }
 0x28d   : > { %v413_v41 = vpop.xlane.xlu0 %412 }
 0x28e   : > { %415 = vst.msk [vmem:[%s284_s12] sm:$0xff] %vm414_vm4, %v413_v41 }
 0x28f   : > { %v419_v42 = vpop.xlane.xlu1 %418 }
 0x290   : > { %421 = vst.msk [vmem:[%s284_s12] sm:$0xff] %vm420_vm5, %v419_v42 }
 0x291 PF: > { %s18_s24 = sadd.s32 1, %s546_s24  }
 0x292   : > { %p15_p4 = scmp.ge.s32.totalorder %s18_s24, 4  }
 0x294   :  { %17 = sbr.rel (!%p15_p4) target bundleno = 1 (0x1), region = 86 }

// kernel: down_forward.5
= control target key start
LH: loop header
LB: loop body
LE: loop exit
PB: predicated region body
PF: predicated region fallthrough
CT: control target
= control target key end

     0   :  { %8 = vsyncpa [#allocation3], 0  ;;  %s1001_s0 = inlined_call_operand.vmem [shape: f32[2,8,80], index: 0, kind: input, shape index: {}]   ;;  %s1002_s1 = inlined_call_operand.vmem [shape: f32[8,1], index: 1, kind: input, shape index: {}]   ;;  %s1003_s2 = inlined_call_operand.vmem [shape: f32[8,1], index: 2, kind: input, shape index: {}]   ;;  %s1004_s3 = inlined_call_operand.hbm [shape: f32[2,8,8,8], index: 3, kind: output, shape index: {}]  }
   0x1   :  { %10 = vsyncpa [#allocation3 + $0x1], 0  ;;  %s672_s12 = smov 0   ;;  %s674_s13 = smov 0  }
   0x2   :  { %s676_s14 = smov 0   ;;  %s678_s15 = smov 0  }
   0x3 LB: > { %s693_s16 = sadd.s32 4294967295, %s640_s15   ;;  %s516_s17 = sadd.s32 4294967294, %s640_s15   ;;  %s640_s15 = sphi %s678_s15, %s1010_s15   ;;  %s636_s14 = sphi %s676_s14, %s1009_s14   ;;  %s632_s13 = sphi %s674_s13, %s1008_s13   ;;  %s628_s12 = sphi %s672_s12, %s1007_s12  }
   0x4   : > { %s697_s18 = sadd.s32 1, %s640_s15   ;;  %s91_s19 = sadd.s32 1, %s636_s14 }
   0x5   : > { %s88_s20 = ssub.s32 %s640_s15, %s697_s18  ;;  %p101_p0 = scmp.ne.s32.totalorder %s636_s14, %s632_s13 }
   0x6   : > { %p89_p1 = scmp.eq.s32.totalorder %s88_s20, 0  ;;  %p102_p2 = scmp.eq.s32.totalorder %s693_s16, 1 }
   0x7   : > { %p107_p3 = scmp.ne.s32.totalorder %s632_s13, %s628_s12  ;;  %p108_p4 = scmp.eq.s32.totalorder %s516_s17, 1 }
   0x8   : > { %s708_s21 = scalar_select %p89_p1, %s636_s14, %s91_s19  }
   0x9   : > { %p710_p5 = por %p102_p2, %p101_p0  ;;  %p714_p6 = por %p108_p4, %p107_p3 }
   0xa   : > { %p519_p7 = scmp.ge.s32.totalorder %s640_s15, 1  ;;  %p139_p8 = scmp.lt.s32.totalorder %s640_s15, 3 }
   0xc   : > { %p140_p9 = pnand %p519_p7, %p139_p8 }
   0xd   : > { %p162_p10 = scmp.lt.s32.totalorder (!%p140_p9), %s693_s16, 1  ;;  %s159_s6 = sand.u32 (!%p140_p9), 1, %s632_s13  }
   0xe   : > { %143 = sbr.rel (%p140_p9) target bundleno = 414 (0x19e), region = 32  ;;  %s520_s7 = sshll.u32 (!%p140_p9), %s159_s6, 6 }
   0xf   : > { %s734_s8 = scalar_lea.vmem (!%p140_p9), [#allocation2], %s520_s7  ;;  %s643_s9 = smov (!%p140_p9), 88  }
  0x10   : > { %s644_s10 = smov (!%p140_p9), 98   ;;  %s645_s11 = smov (!%p140_p9), 118  }
  0x11   : > { %s646_s17 = smov (!%p140_p9), 68   ;;  %s647_s19 = smov (!%p140_p9), 108  }
  0x12   : > { %s648_s20 = smov (!%p140_p9), 78   ;;  %s649_s24 = smov (!%p140_p9), 58  }
  0x13   : > { %v167_v0 = vld [vmem:[%s1002_s1] sm:$0xff]  ;;  %v642_v1 = vmov 0   ;;  %s163_s28 = scalar_select %p162_p10, %s693_s16, 1  ;;  %vm197_vm0 = vcmask 57344  }
  0x14   : > { %577 = vset.pattern.permute.xlu0 %v642_v1  ;;  %v174_v2 = vld [vmem:[%s1003_s2] sm:$0xff]  ;;  %s527_s25 = sshll.u32 %s693_s16, 6  ;;  %s439_s16 = scalar_lea.sflag [#allocation3], %s159_s6 }
  0x15   : > { %170 = vperm.xlu0 %577, %v167_v0   ;;  %s521_s29 = sshll.u32 %s163_s28, 3  ;;  %s450_s28 = scalar_lea.hbm %s1004_s3, %s527_s25 }
  0x16   : > { %s165_s5 = scalar_lea.vmem %s1001_s0, %s521_s29  ;;  %s451_s29 = sshll.u32 %s734_s8, 4  ;;  %s452_s29 = int_to_ptr.vmem [resolvable:$true] %s451_s29 }
  0x17   : > { %v166_v4 = vld [vmem:[%s165_s5] sm:$0xff]  ;;  %s453_s30 = sshll.u32 %s450_s28, 4  ;;  %s454_s30 = int_to_ptr.hbm [resolvable:$true] %s453_s30 }
  0x18   : > { %s592_s4 = sshra.s32 %s454_s30, 4  ;;  %s593_s4 = int_to_ptr.hbm [resolvable:$true] %s592_s4 }
  0x19   : > { %s594_s5 = scalar_lea.hbm %s593_s4, 64  ;;  %p599_p0 = scmp.lt.s32.totalorder %s593_s4, %s1004_s3 }
  0x1a   : > { %p595_p11 = scmp.ne.s32.totalorder %s593_s4, %s594_s5 }
  0x1c   : > { %p596_p12 = pnand %p595_p11, %p710_p5 }
  0x1d   : > { %177 = vperm.xlu0 %577, %v174_v2  }
  0x1e   : > { %p597_p13 = pneg %p596_p12 }
  0x87   : > { %v171_v3 = vpop.permute.xlu0 %170 }
  0x88   : > { %v173_v5 = vmul.f32 %v171_v3, %v166_v4 }
  0x8f   : > { %v178_v6 = vpop.permute.xlu0 %177 }
  0x90   : > { %v180_v7 = vadd.f32 %v178_v6, %v173_v5 }
  0x92   : > { %v181_v8 = vmax.f32 %v180_v7, 0.0 }
  0x94   : > { %198 = vst.msk [vmem:[%s734_s8] sm:$0x1] %vm197_vm0, %v181_v8  ;;  %v738_v9 = vperm.slane %v181_v8, 0  ;;  %v184_v10 = vrot.slane %v181_v8, 2  ;;  %v186_v11 = vrot.slane %v181_v8, 4  ;;  %v185_v12 = vrot.slane %v181_v8, 3 }
  0x95   : > { %v189_v13 = vrot.slane %v181_v8, 7  ;;  %v188_v14 = vrot.slane %v181_v8, 6  ;;  %v183_v15 = vrot.slane %v181_v8, 1  ;;  %v187_v16 = vrot.slane %v181_v8, 5 }
  0x96   : > { %310 = vrot.lane.b32.xlu2 %v738_v9, %s643_s9  ;;  %278 = vrot.lane.b32.xlu0 %v738_v9, %s644_s10  ;;  %200 = vst.msk [vmem:[%s734_s8 + $0x10] sm:$0x1] %vm197_vm0, %v184_v10  ;;  %v758_v17 = vperm.slane %v184_v10, 0  ;;  %v767_v18 = vperm.slane %v186_v11, 0  ;;  %v769_v19 = vperm.slane %v185_v12, 0 }
  0x97   : > { %214 = vrot.lane.b32.xlu1 %v738_v9, %s645_s11  ;;  %202 = vst.msk [vmem:[%s734_s8 + $0x20] sm:$0x1] %vm197_vm0, %v186_v11  ;;  %v777_v20 = vperm.slane %v189_v13, 0  ;;  %v779_v21 = vperm.slane %v188_v14, 0  ;;  %v207_v22 = vperm.slane %v183_v15, 0  ;;  %v786_v23 = vperm.slane %v187_v16, 0 }
  0x98   : > { %201 = vst.msk [vmem:[%s734_s8 + $0x18] sm:$0x1] %vm197_vm0, %v185_v12 }
  0x99   : > { %205 = vst.msk [vmem:[%s734_s8 + $0x38] sm:$0x1] %vm197_vm0, %v189_v13 }
  0x9a   : > { %204 = vst.msk [vmem:[%s734_s8 + $0x30] sm:$0x1] %vm197_vm0, %v188_v14 }
  0x9b   : > { %199 = vst.msk [vmem:[%s734_s8 + $0x8] sm:$0x1] %vm197_vm0, %v183_v15 }
  0x9c   : > { %203 = vst.msk [vmem:[%s734_s8 + $0x28] sm:$0x1] %vm197_vm0, %v187_v16 }
  0x9e   : > { %374 = vrot.lane.b32.xlu0 %v738_v9, %s646_s17  ;;  %218 = vrot.lane.b32.xlu2 %v758_v17, %s645_s11 }
  0x9f   : > { %246 = vrot.lane.b32.xlu1 %v738_v9, %s647_s19 }
  0xa6   : > { %222 = vrot.lane.b32.xlu0 %v767_v18, %s645_s11  ;;  %220 = vrot.lane.b32.xlu2 %v769_v19, %s645_s11 }
  0xa7   : > { %342 = vrot.lane.b32.xlu1 %v738_v9, %s648_s20 }
  0xae   : > { %228 = vrot.lane.b32.xlu0 %v777_v20, %s645_s11  ;;  %226 = vrot.lane.b32.xlu2 %v779_v21, %s645_s11 }
  0xaf   : > { %216 = vrot.lane.b32.xlu1 %v207_v22, %s645_s11 }
  0xb6   : > { %250 = vrot.lane.b32.xlu0 %v758_v17, %s647_s19  ;;  %248 = vrot.lane.b32.xlu2 %v207_v22, %s647_s19 }
  0xb7   : > { %224 = vrot.lane.b32.xlu1 %v786_v23, %s645_s11 }
  0xbe   : > { %256 = vrot.lane.b32.xlu0 %v786_v23, %s647_s19  ;;  %254 = vrot.lane.b32.xlu2 %v767_v18, %s647_s19 }
  0xbf   : > { %252 = vrot.lane.b32.xlu1 %v769_v19, %s647_s19 }
  0xc6   : > { %284 = vrot.lane.b32.xlu0 %v769_v19, %s644_s10  ;;  %260 = vrot.lane.b32.xlu2 %v777_v20, %s647_s19 }
  0xc7   : > { %258 = vrot.lane.b32.xlu1 %v779_v21, %s647_s19 }
  0xce   : > { %290 = vrot.lane.b32.xlu0 %v779_v21, %s644_s10  ;;  %282 = vrot.lane.b32.xlu2 %v758_v17, %s644_s10 }
  0xcf   : > { %280 = vrot.lane.b32.xlu1 %v207_v22, %s644_s10 }
  0xd6   : > { %312 = vrot.lane.b32.xlu0 %v207_v22, %s643_s9  ;;  %288 = vrot.lane.b32.xlu2 %v786_v23, %s644_s10 }
  0xd7   : > { %286 = vrot.lane.b32.xlu1 %v767_v18, %s644_s10 }
  0xde   : > { %318 = vrot.lane.b32.xlu0 %v767_v18, %s643_s9  ;;  %316 = vrot.lane.b32.xlu2 %v769_v19, %s643_s9 }
  0xdf   : > { %292 = vrot.lane.b32.xlu1 %v777_v20, %s644_s10  ;;  %s598_s10 = scalar_lea.hbm %s1004_s3, 128 }
  0xe0   : > { %p600_p1 = scmp.lt.s32.totalorder %s598_s10, %s594_s5 }
  0xe2   : > { %p601_p2 = por %p600_p1, %p599_p0 }
  0xe4   : > { %p602_p3 = pnand %p601_p2, %p597_p13 }
  0xe6   : > { %324 = vrot.lane.b32.xlu0 %v777_v20, %s643_s9  ;;  %322 = vrot.lane.b32.xlu2 %v779_v21, %s643_s9 }
  0xe7   : > { %314 = vrot.lane.b32.xlu1 %v758_v17, %s643_s9 }
  0xee   : > { %346 = vrot.lane.b32.xlu0 %v758_v17, %s648_s20  ;;  %344 = vrot.lane.b32.xlu2 %v207_v22, %s648_s20 }
  0xef   : > { %320 = vrot.lane.b32.xlu1 %v786_v23, %s643_s9 }
  0xf0   : > { %v311_v24 = vpop.permute.xlu2 %310 }
  0xf1   : > { %334 = vst.msk [vmem:[%s734_s8 + $0x4] sm:$0x1] %vm197_vm0, %v311_v24 }
  0xf6   : > { %352 = vrot.lane.b32.xlu0 %v786_v23, %s648_s20  ;;  %350 = vrot.lane.b32.xlu2 %v767_v18, %s648_s20 }
  0xf7   : > { %348 = vrot.lane.b32.xlu1 %v769_v19, %s648_s20 }
  0xf8   : > { %v219_v25 = vpop.permute.xlu2 %218 }
  0xf9   : > { %240 = vst.msk [vmem:[%s734_s8 + $0x11] sm:$0x1] %vm197_vm0, %v219_v25 }
  0xfe   : > { %380 = vrot.lane.b32.xlu0 %v769_v19, %s646_s17  ;;  %356 = vrot.lane.b32.xlu2 %v777_v20, %s648_s20 }
  0xff   : > { %354 = vrot.lane.b32.xlu1 %v779_v21, %s648_s20 }
 0x100   : > { %v221_v26 = vpop.permute.xlu2 %220 }
 0x101   : > { %241 = vst.msk [vmem:[%s734_s8 + $0x19] sm:$0x1] %vm197_vm0, %v221_v26 }
 0x106   : > { %386 = vrot.lane.b32.xlu0 %v779_v21, %s646_s17  ;;  %378 = vrot.lane.b32.xlu2 %v758_v17, %s646_s17 }
 0x107   : > { %376 = vrot.lane.b32.xlu1 %v207_v22, %s646_s17 }
 0x108   : > { %v279_v27 = vpop.permute.xlu0 %278  ;;  %v227_v28 = vpop.permute.xlu2 %226 }
 0x109   : > { %302 = vst.msk [vmem:[%s734_s8 + $0x3] sm:$0x1] %vm197_vm0, %v279_v27  ;;  %v215_v29 = vpop.permute.xlu1 %214 }
 0x10a   : > { %238 = vst.msk [vmem:[%s734_s8 + $0x1] sm:$0x1] %vm197_vm0, %v215_v29 }
 0x10b   : > { %244 = vst.msk [vmem:[%s734_s8 + $0x31] sm:$0x1] %vm197_vm0, %v227_v28 }
 0x10e   : > { %408 = vrot.lane.b32.xlu0 %v207_v22, %s649_s24  ;;  %384 = vrot.lane.b32.xlu2 %v786_v23, %s646_s17 }
 0x10f   : > { %382 = vrot.lane.b32.xlu1 %v767_v18, %s646_s17 }
 0x110   : > { %v375_v30 = vpop.permute.xlu0 %374  ;;  %v249_v31 = vpop.permute.xlu2 %248 }
 0x111   : > { %398 = vst.msk [vmem:[%s734_s8 + $0x6] sm:$0x1] %vm197_vm0, %v375_v30  ;;  %v247_v32 = vpop.permute.xlu1 %246 }
 0x112   : > { %270 = vst.msk [vmem:[%s734_s8 + $0x2] sm:$0x1] %vm197_vm0, %v247_v32 }
 0x113   : > { %271 = vst.msk [vmem:[%s734_s8 + $0xa] sm:$0x1] %vm197_vm0, %v249_v31 }
 0x116   : > { %414 = vrot.lane.b32.xlu0 %v767_v18, %s649_s24  ;;  %406 = vrot.lane.b32.xlu2 %v738_v9, %s649_s24 }
 0x117   : > { %388 = vrot.lane.b32.xlu1 %v777_v20, %s646_s17 }
 0x118   : > { %v223_v33 = vpop.permute.xlu0 %222  ;;  %v255_v34 = vpop.permute.xlu2 %254 }
 0x119   : > { %v343_v35 = vpop.permute.xlu1 %342  ;;  %242 = vst.msk [vmem:[%s734_s8 + $0x21] sm:$0x1] %vm197_vm0, %v223_v33 }
 0x11a   : > { %366 = vst.msk [vmem:[%s734_s8 + $0x5] sm:$0x1] %vm197_vm0, %v343_v35 }
 0x11b   : > { %274 = vst.msk [vmem:[%s734_s8 + $0x22] sm:$0x1] %vm197_vm0, %v255_v34 }
 0x11e   : > { %420 = vrot.lane.b32.xlu0 %v777_v20, %s649_s24  ;;  %412 = vrot.lane.b32.xlu2 %v769_v19, %s649_s24 }
 0x11f   : > { %410 = vrot.lane.b32.xlu1 %v758_v17, %s649_s24 }
 0x120   : > { %v229_v36 = vpop.permute.xlu0 %228  ;;  %v261_v37 = vpop.permute.xlu2 %260 }
 0x121   : > { %245 = vst.msk [vmem:[%s734_s8 + $0x39] sm:$0x1] %vm197_vm0, %v229_v36  ;;  %v217_v38 = vpop.permute.xlu1 %216 }
 0x122   : > { %277 = vst.msk [vmem:[%s734_s8 + $0x3a] sm:$0x1] %vm197_vm0, %v261_v37 }
 0x123   : > { %239 = vst.msk [vmem:[%s734_s8 + $0x9] sm:$0x1] %vm197_vm0, %v217_v38 }
 0x126   : > { %418 = vrot.lane.b32.xlu2 %v779_v21, %s649_s24 }
 0x127   : > { %416 = vrot.lane.b32.xlu1 %v786_v23, %s649_s24 }
 0x128   : > { %v251_v39 = vpop.permute.xlu0 %250  ;;  %v283_v40 = vpop.permute.xlu2 %282 }
 0x129   : > { %272 = vst.msk [vmem:[%s734_s8 + $0x12] sm:$0x1] %vm197_vm0, %v251_v39  ;;  %v225_v41 = vpop.permute.xlu1 %224 }
 0x12a   : > { %304 = vst.msk [vmem:[%s734_s8 + $0x13] sm:$0x1] %vm197_vm0, %v283_v40 }
 0x12b   : > { %243 = vst.msk [vmem:[%s734_s8 + $0x29] sm:$0x1] %vm197_vm0, %v225_v41 }
 0x130   : > { %v257_v42 = vpop.permute.xlu0 %256  ;;  %v289_v43 = vpop.permute.xlu2 %288 }
 0x131   : > { %275 = vst.msk [vmem:[%s734_s8 + $0x2a] sm:$0x1] %vm197_vm0, %v257_v42  ;;  %v253_v44 = vpop.permute.xlu1 %252 }
 0x132   : > { %307 = vst.msk [vmem:[%s734_s8 + $0x2b] sm:$0x1] %vm197_vm0, %v289_v43 }
 0x133   : > { %273 = vst.msk [vmem:[%s734_s8 + $0x1a] sm:$0x1] %vm197_vm0, %v253_v44 }
 0x138   : > { %v285_v45 = vpop.permute.xlu0 %284  ;;  %v317_v46 = vpop.permute.xlu2 %316 }
 0x139   : > { %305 = vst.msk [vmem:[%s734_s8 + $0x1b] sm:$0x1] %vm197_vm0, %v285_v45  ;;  %v259_v47 = vpop.permute.xlu1 %258 }
 0x13a   : > { %337 = vst.msk [vmem:[%s734_s8 + $0x1c] sm:$0x1] %vm197_vm0, %v317_v46 }
 0x13b   : > { %276 = vst.msk [vmem:[%s734_s8 + $0x32] sm:$0x1] %vm197_vm0, %v259_v47 }
 0x140   : > { %v291_v48 = vpop.permute.xlu0 %290  ;;  %v323_v49 = vpop.permute.xlu2 %322 }
 0x141   : > { %308 = vst.msk [vmem:[%s734_s8 + $0x33] sm:$0x1] %vm197_vm0, %v291_v48  ;;  %v281_v50 = vpop.permute.xlu1 %280 }
 0x142   : > { %340 = vst.msk [vmem:[%s734_s8 + $0x34] sm:$0x1] %vm197_vm0, %v323_v49 }
 0x143   : > { %303 = vst.msk [vmem:[%s734_s8 + $0xb] sm:$0x1] %vm197_vm0, %v281_v50 }
 0x148   : > { %v313_v51 = vpop.permute.xlu0 %312  ;;  %v345_v52 = vpop.permute.xlu2 %344 }
 0x149   : > { %335 = vst.msk [vmem:[%s734_s8 + $0xc] sm:$0x1] %vm197_vm0, %v313_v51  ;;  %v287_v53 = vpop.permute.xlu1 %286 }
 0x14a   : > { %367 = vst.msk [vmem:[%s734_s8 + $0xd] sm:$0x1] %vm197_vm0, %v345_v52 }
 0x14b   : > { %306 = vst.msk [vmem:[%s734_s8 + $0x23] sm:$0x1] %vm197_vm0, %v287_v53 }
 0x150   : > { %v319_v54 = vpop.permute.xlu0 %318  ;;  %v351_v55 = vpop.permute.xlu2 %350 }
 0x151   : > { %338 = vst.msk [vmem:[%s734_s8 + $0x24] sm:$0x1] %vm197_vm0, %v319_v54  ;;  %v293_v56 = vpop.permute.xlu1 %292 }
 0x152   : > { %370 = vst.msk [vmem:[%s734_s8 + $0x25] sm:$0x1] %vm197_vm0, %v351_v55 }
 0x153   : > { %309 = vst.msk [vmem:[%s734_s8 + $0x3b] sm:$0x1] %vm197_vm0, %v293_v56 }
 0x158   : > { %v325_v57 = vpop.permute.xlu0 %324  ;;  %v357_v58 = vpop.permute.xlu2 %356 }
 0x159   : > { %341 = vst.msk [vmem:[%s734_s8 + $0x3c] sm:$0x1] %vm197_vm0, %v325_v57  ;;  %v315_v59 = vpop.permute.xlu1 %314 }
 0x15a   : > { %373 = vst.msk [vmem:[%s734_s8 + $0x3d] sm:$0x1] %vm197_vm0, %v357_v58 }
 0x15b   : > { %336 = vst.msk [vmem:[%s734_s8 + $0x14] sm:$0x1] %vm197_vm0, %v315_v59 }
 0x160   : > { %v347_v60 = vpop.permute.xlu0 %346  ;;  %v379_v61 = vpop.permute.xlu2 %378 }
 0x161   : > { %368 = vst.msk [vmem:[%s734_s8 + $0x15] sm:$0x1] %vm197_vm0, %v347_v60  ;;  %v321_v62 = vpop.permute.xlu1 %320 }
 0x162   : > { %400 = vst.msk [vmem:[%s734_s8 + $0x16] sm:$0x1] %vm197_vm0, %v379_v61 }
 0x163   : > { %339 = vst.msk [vmem:[%s734_s8 + $0x2c] sm:$0x1] %vm197_vm0, %v321_v62 }
 0x168   : > { %v353_v63 = vpop.permute.xlu0 %352  ;;  %v385_v0 = vpop.permute.xlu2 %384 }
 0x169   : > { %371 = vst.msk [vmem:[%s734_s8 + $0x2d] sm:$0x1] %vm197_vm0, %v353_v63  ;;  %v349_v1 = vpop.permute.xlu1 %348 }
 0x16a   : > { %403 = vst.msk [vmem:[%s734_s8 + $0x2e] sm:$0x1] %vm197_vm0, %v385_v0 }
 0x16b   : > { %369 = vst.msk [vmem:[%s734_s8 + $0x1d] sm:$0x1] %vm197_vm0, %v349_v1 }
 0x170   : > { %v381_v2 = vpop.permute.xlu0 %380  ;;  %v407_v3 = vpop.permute.xlu2 %406 }
 0x171   : > { %401 = vst.msk [vmem:[%s734_s8 + $0x1e] sm:$0x1] %vm197_vm0, %v381_v2  ;;  %v355_v4 = vpop.permute.xlu1 %354 }
 0x172   : > { %430 = vst.msk [vmem:[%s734_s8 + $0x7] sm:$0x1] %vm197_vm0, %v407_v3 }
 0x173   : > { %372 = vst.msk [vmem:[%s734_s8 + $0x35] sm:$0x1] %vm197_vm0, %v355_v4 }
 0x178   : > { %v387_v5 = vpop.permute.xlu0 %386  ;;  %v413_v6 = vpop.permute.xlu2 %412 }
 0x179   : > { %404 = vst.msk [vmem:[%s734_s8 + $0x36] sm:$0x1] %vm197_vm0, %v387_v5  ;;  %v377_v7 = vpop.permute.xlu1 %376 }
 0x17a   : > { %433 = vst.msk [vmem:[%s734_s8 + $0x1f] sm:$0x1] %vm197_vm0, %v413_v6 }
 0x17b   : > { %399 = vst.msk [vmem:[%s734_s8 + $0xe] sm:$0x1] %vm197_vm0, %v377_v7 }
 0x180   : > { %v409_v8 = vpop.permute.xlu0 %408  ;;  %v419_v9 = vpop.permute.xlu2 %418 }
 0x181   : > { %431 = vst.msk [vmem:[%s734_s8 + $0xf] sm:$0x1] %vm197_vm0, %v409_v8  ;;  %v383_v10 = vpop.permute.xlu1 %382 }
 0x182   : > { %436 = vst.msk [vmem:[%s734_s8 + $0x37] sm:$0x1] %vm197_vm0, %v419_v9 }
 0x183   : > { %402 = vst.msk [vmem:[%s734_s8 + $0x26] sm:$0x1] %vm197_vm0, %v383_v10 }
 0x188   : > { %v415_v11 = vpop.permute.xlu0 %414 }
 0x189   : > { %434 = vst.msk [vmem:[%s734_s8 + $0x27] sm:$0x1] %vm197_vm0, %v415_v11  ;;  %v389_v12 = vpop.permute.xlu1 %388 }
 0x18a   : > { %405 = vst.msk [vmem:[%s734_s8 + $0x3e] sm:$0x1] %vm197_vm0, %v389_v12 }
 0x190   : > { %v421_v13 = vpop.permute.xlu0 %420 }
 0x191   : > { %437 = vst.msk [vmem:[%s734_s8 + $0x3f] sm:$0x1] %vm197_vm0, %v421_v13  ;;  %v411_v14 = vpop.permute.xlu1 %410 }
 0x192   : > { %432 = vst.msk [vmem:[%s734_s8 + $0x17] sm:$0x1] %vm197_vm0, %v411_v14 }
 0x199   : > { %v417_v15 = vpop.permute.xlu1 %416 }
 0x19a   : > { %435 = vst.msk [vmem:[%s734_s8 + $0x2f] sm:$0x1] %vm197_vm0, %v417_v15 }
 0x19b   : > { %605 = shalt.err (!%p602_p3)
}
 0x19c   : > { %s650_s6 = smov 128   ;;  %s651_s8 = smov 8  }
 0x19d   : > { %528 = dma.vmem_to_hbm [thread:$0]  (%p710_p5), %s452_s29, 1024, %s454_s30, %s439_s16, %s650_s6, %s650_s6, %s651_s8  }
 0x19e PF: > { %p534_p4 = scmp.ge.s32.totalorder %s640_s15, 2  ;;  %s468_s19 = sand.u32 1, %s628_s12  }
 0x19f   : > { %s469_s20 = scalar_lea.sflag [#allocation3], %s468_s19 }
 0x1a0   : > { %p531_p7 = pnand %p534_p4, %p714_p6 }
 0x1a2   : > { %p532_p8 = pneg %p531_p7 }
 0x1a4   : > { %623 = dma.done.wait (%p532_p8), %s469_s20, 1024  }
 0x1a5   : > { %625 = vsyncadd (%p532_p8), %s469_s20, 4294966272  ;;  %p13_p9 = scmp.ge.s32.totalorder %s697_s18, 4   ;;  %s1007_s12 = smov %s632_s13 }
 0x1a6   : > { %s1008_s13 = smov %s636_s14  ;;  %s1009_s14 = smov %s708_s21 }
 0x1a7   : > { %s1010_s15 = smov %s697_s18  ;;  %15 = sbr.rel (!%p13_p9) target bundleno = 3 (0x3), region = 67 }
 0x1ac   :  { %475 = vsyncpa [#allocation3], 1 }
 0x1ad   :  { %477 = vsyncpa [#allocation3 + $0x1], 1 }

// kernel: down_forward.3
= control target key start
LH: loop header
LB: loop body
LE: loop exit
PB: predicated region body
PF: predicated region fallthrough
CT: control target
= control target key end

     0   :  { %s1015_s21 = smov 0   ;;  %s1181_s0 = inlined_call_operand.vmem [shape: f32[2,4,16,16], index: 0, kind: input, shape index: {}]   ;;  %s1182_s1 = inlined_call_operand.vmem [shape: f32[8,36], index: 1, kind: input, shape index: {}]   ;;  %s1183_s2 = inlined_call_operand.vmem [shape: f32[8,1], index: 2, kind: input, shape index: {}]   ;;  %s1184_s3 = inlined_call_operand.vmem [shape: f32[16,16], index: 3, kind: input, shape index: {}]   ;;  %s1185_s4 = inlined_call_operand.vmem [shape: f32[1,80], index: 4, kind: input, shape index: {}]   ;;  %s1186_s5 = inlined_call_operand.vmem [shape: f32[2,8,80], index: 5, kind: output, shape index: {0}]   ;;  %s1187_s6 = inlined_call_operand.vmem [shape: f32[2,8,2], index: 6, kind: output, shape index: {1}]  }
   0x1 LB: > { %s902_s22 = sadd.s32 4294967295, %s959_s21   ;;  %p906_p0 = scmp.ge.s32.totalorder %s959_s21, 1  ;;  %s959_s21 = sphi %s1015_s21, %s17_s21  }
   0x2   : > { %p215_p1 = scmp.lt.s32.totalorder %s959_s21, 3 }
   0x4   : > { %p216_p2 = pnand %p906_p0, %p215_p1 }
   0x5   : > { %p248_p3 = scmp.lt.s32.totalorder (!%p216_p2), %s902_s22, 1  ;;  %s961_s7 = smov (!%p216_p2), 120  }
   0x6   : > { %219 = sbr.rel (%p216_p2) target bundleno = 810 (0x32a), region = 40  ;;  %s962_s8 = smov (!%p216_p2), 51  }
   0x7   : > { %s963_s9 = smov (!%p216_p2), 11   ;;  %s964_s10 = smov (!%p216_p2), 31  }
   0x8   : > { %s965_s11 = smov (!%p216_p2), 21   ;;  %s966_s12 = smov (!%p216_p2), 61  }
   0x9   : > { %s967_s13 = smov (!%p216_p2), 41   ;;  %s968_s14 = smov (!%p216_p2), 71  }
   0xa   : > { %s969_s15 = smov (!%p216_p2), 81   ;;  %s971_s16 = smov (!%p216_p2), 106  }
   0xb   : > { %v1026_v0 = vld [vmem:[%s1184_s3 + $0x8] sm:$0xff]  ;;  %v1031_v1 = vld [vmem:[%s1184_s3] sm:$0xff]  ;;  %s1189_s22 = smov (!%p248_p3, %s902_s22), 1  ;;  %vm282_vm0 = vcmask 1041409   ;;  %vm285_vm1 = vcmask 1042434   ;;  %vm288_vm2 = vcmask 1043459  }
   0xc   : > { %307 = vmatpush.msra.mxu1 %v1026_v0  ;;  %417 = vmatpush.msra.mxu2 %v1026_v0  ;;  %s923_s27 = sshll.u32 %s1189_s22, 6  ;;  %vm290_vm3 = vcmask 130048   ;;  %vm261_vm4 = vcmask 830464   ;;  %vm322_vm5 = vcmask 150616   ;;  %vm377_vm6 = vcmask 232616   ;;  %s972_s17 = smov 107  }
   0xd   : > { %527 = vmatpush.msra.mxu0 %v1026_v0  ;;  %472 = vmatpush.msra.mxu3 %v1026_v0  ;;  %s1047_s30 = scalar_lea.vmem %s1181_s0, %s923_s27  ;;  %vm432_vm7 = vcmask 314616   ;;  %vm487_vm8 = vcmask 396616   ;;  %vm542_vm9 = vcmask 478616   ;;  %vm597_vm10 = vcmask 560616   ;;  %s973_s18 = smov 108  }
   0xe   : > { %308 = vmatpush.msra.mxu1 %v1031_v1  ;;  %418 = vmatpush.msra.mxu2 %v1031_v1  ;;  %v265_v2 = vld [vmem:[%s1047_s30] sm:$0x1]  ;;  %v266_v3 = vld [vmem:[%s1047_s30 + $0x10] sm:$0x1]  ;;  %v269_v6 = vld [vmem:[%s1047_s30 + $0x1] sm:$0x1] }
   0xf   : > { %528 = vmatpush.msra.mxu0 %v1031_v1  ;;  %473 = vmatpush.msra.mxu3 %v1031_v1  ;;  %v267_v4 = vld [vmem:[%s1047_s30 + $0x20] sm:$0x1]  ;;  %v268_v5 = vld [vmem:[%s1047_s30 + $0x30] sm:$0x1]  ;;  %v270_v7 = vld [vmem:[%s1047_s30 + $0x11] sm:$0x1]  ;;  %v273_v10 = vmax.f32 %v265_v2, %v269_v6 }
  0x10   : > { %362 = vmatpush.msrb.mxu1 %v1026_v0  ;;  %637 = vmatpush.msrb.mxu2 %v1026_v0  ;;  %v271_v8 = vld [vmem:[%s1047_s30 + $0x21] sm:$0x1]  ;;  %v272_v9 = vld [vmem:[%s1047_s30 + $0x31] sm:$0x1]  ;;  %v274_v11 = vmax.f32 %v266_v3, %v270_v7  ;;  %v379_v12 = vld [vmem:[%s1047_s30 + $0x4] sm:$0x1] }
  0x11   : > { %692 = vmatpush.msrb.mxu3 %v1026_v0  ;;  %v275_v13 = vmax.f32 %v267_v4, %v271_v8  ;;  %v276_v14 = vmax.f32 %v268_v5, %v272_v9  ;;  %v380_v15 = vld [vmem:[%s1047_s30 + $0x14] sm:$0x1]  ;;  %v381_v16 = vld [vmem:[%s1047_s30 + $0x24] sm:$0x1]  ;;  %v383_v19 = vld [vmem:[%s1047_s30 + $0x5] sm:$0x1] }
  0x12   : > { %363 = vmatpush.msrb.mxu1 %v1031_v1  ;;  %638 = vmatpush.msrb.mxu2 %v1031_v1  ;;  %v382_v17 = vld [vmem:[%s1047_s30 + $0x34] sm:$0x1]  ;;  %v281_v18 = vrot.slane %v274_v11, 7  ;;  %v384_v20 = vld [vmem:[%s1047_s30 + $0x15] sm:$0x1]  ;;  %v387_v25 = vmax.f32 %v379_v12, %v383_v19  ;;  %vm652_vm11 = vcmask 642616  }
  0x13   : > { %693 = vmatpush.msrb.mxu3 %v1031_v1  ;;  %v284_v21 = vrot.slane %v275_v13, 6  ;;  %v287_v22 = vrot.slane %v276_v14, 5  ;;  %v385_v23 = vld [vmem:[%s1047_s30 + $0x25] sm:$0x1]  ;;  %v386_v24 = vld [vmem:[%s1047_s30 + $0x35] sm:$0x1]  ;;  %v388_v26 = vmax.f32 %v380_v15, %v384_v20 }
  0x14   : > { %v283_v27 = vsel %vm282_vm0, %v281_v18, %v273_v10  ;;  %v389_v28 = vmax.f32 %v381_v16, %v385_v23  ;;  %v390_v29 = vmax.f32 %v382_v17, %v386_v24  ;;  %v489_v30 = vld [vmem:[%s1047_s30 + $0x8] sm:$0x1]  ;;  %v490_v31 = vld [vmem:[%s1047_s30 + $0x18] sm:$0x1]  ;;  %v493_v36 = vld [vmem:[%s1047_s30 + $0x9] sm:$0x1] }
  0x15   : > { %v491_v32 = vld [vmem:[%s1047_s30 + $0x28] sm:$0x1]  ;;  %v286_v33 = vsel %vm285_vm1, %v284_v21, %v283_v27  ;;  %v395_v34 = vrot.slane %v388_v26, 7  ;;  %v492_v35 = vld [vmem:[%s1047_s30 + $0x38] sm:$0x1]  ;;  %v497_v44 = vmax.f32 %v489_v30, %v493_v36  ;;  %vm707_vm12 = vcmask 724616  }
  0x16   : > { %v289_v37 = vsel %vm288_vm2, %v287_v22, %v286_v33  ;;  %v397_v38 = vrot.slane %v389_v28, 6  ;;  %v399_v39 = vrot.slane %v390_v29, 5  ;;  %v494_v40 = vld [vmem:[%s1047_s30 + $0x19] sm:$0x1]  ;;  %v495_v41 = vld [vmem:[%s1047_s30 + $0x29] sm:$0x1] }
  0x17   : > { %911 = vmatmul.msk.f32.vlgmr.msra.gmra.mxu1 %vm290_vm3, %v289_v37  ;;  %v396_v42 = vsel %vm282_vm0, %v395_v34, %v387_v25  ;;  %v496_v43 = vld [vmem:[%s1047_s30 + $0x39] sm:$0x1]  ;;  %v498_v45 = vmax.f32 %v490_v31, %v494_v40  ;;  %v499_v46 = vmax.f32 %v491_v32, %v495_v41  ;;  %v324_v47 = vld [vmem:[%s1047_s30 + $0x2] sm:$0x1]  ;;  %v325_v48 = vld [vmem:[%s1047_s30 + $0x12] sm:$0x1] }
  0x18   : > { %v398_v49 = vsel %vm285_vm1, %v397_v38, %v396_v42  ;;  %v500_v50 = vmax.f32 %v492_v35, %v496_v43  ;;  %v326_v51 = vld [vmem:[%s1047_s30 + $0x22] sm:$0x1]  ;;  %v327_v52 = vld [vmem:[%s1047_s30 + $0x32] sm:$0x1]  ;;  %v328_v53 = vld [vmem:[%s1047_s30 + $0x3] sm:$0x1]  ;;  %582 = vmatpush.msra.mxu1 %v1026_v0 }
  0x19   : > { %v400_v54 = vsel %vm288_vm2, %v399_v39, %v398_v49  ;;  %v505_v55 = vrot.slane %v498_v45, 7  ;;  %v507_v56 = vrot.slane %v499_v46, 6  ;;  %v329_v57 = vld [vmem:[%s1047_s30 + $0x13] sm:$0x1]  ;;  %v330_v58 = vld [vmem:[%s1047_s30 + $0x23] sm:$0x1]  ;;  %v332_v61 = vmax.f32 %v324_v47, %v328_v53 }
  0x1a   : > { %913 = vmatmul.msk.f32.vlgmr.msra.gmra.mxu2 %vm290_vm3, %v400_v54  ;;  %v509_v59 = vrot.slane %v500_v50, 5  ;;  %v331_v60 = vld [vmem:[%s1047_s30 + $0x33] sm:$0x1]  ;;  %v333_v62 = vmax.f32 %v325_v48, %v329_v57  ;;  %v334_v63 = vmax.f32 %v326_v51, %v330_v58  ;;  %v434_v0 = vld [vmem:[%s1047_s30 + $0x6] sm:$0x1]  ;;  %583 = vmatpush.msra.mxu1 %v1031_v1  ;;  %vm710_vm13 = vcmask 650240  }
  0x1b   : > { %v506_v2 = vsel %vm282_vm0, %v505_v55, %v497_v44  ;;  %v335_v3 = vmax.f32 %v327_v52, %v331_v60  ;;  %v435_v4 = vld [vmem:[%s1047_s30 + $0x16] sm:$0x1]  ;;  %v436_v5 = vld [vmem:[%s1047_s30 + $0x26] sm:$0x1]  ;;  %v438_v10 = vld [vmem:[%s1047_s30 + $0x7] sm:$0x1] }
  0x1c   : > { %v437_v6 = vld [vmem:[%s1047_s30 + $0x36] sm:$0x1]  ;;  %v508_v7 = vsel %vm285_vm1, %v507_v56, %v506_v2  ;;  %v340_v8 = vrot.slane %v333_v62, 7  ;;  %v342_v9 = vrot.slane %v334_v63, 6  ;;  %v439_v11 = vld [vmem:[%s1047_s30 + $0x17] sm:$0x1]  ;;  %v442_v15 = vmax.f32 %v434_v0, %v438_v10 }
  0x1d   : > { %v510_v12 = vsel %vm288_vm2, %v509_v59, %v508_v7  ;;  %v344_v1 = vrot.slane %v335_v3, 5  ;;  %v440_v13 = vld [vmem:[%s1047_s30 + $0x27] sm:$0x1]  ;;  %v441_v14 = vld [vmem:[%s1047_s30 + $0x37] sm:$0x1]  ;;  %v443_v16 = vmax.f32 %v435_v4, %v439_v11  ;;  %s974_s19 = smov 117  }
  0x1e   : > { %915 = vmatmul.msk.f32.vlgmr.msra.gmra.mxu0 %vm290_vm3, %v510_v12  ;;  %v341_v17 = vsel %vm282_vm0, %v340_v8, %v332_v61  ;;  %v444_v18 = vmax.f32 %v436_v5, %v440_v13  ;;  %v445_v19 = vmax.f32 %v437_v6, %v441_v14  ;;  %v599_v20 = vld [vmem:[%s1047_s30 + $0xc] sm:$0x1]  ;;  %v600_v21 = vld [vmem:[%s1047_s30 + $0x1c] sm:$0x1]  ;;  %v603_v26 = vld [vmem:[%s1047_s30 + $0xd] sm:$0x1] }
  0x1f   : > { %v601_v22 = vld [vmem:[%s1047_s30 + $0x2c] sm:$0x1]  ;;  %v343_v23 = vsel %vm285_vm1, %v342_v9, %v341_v17  ;;  %v450_v24 = vrot.slane %v443_v16, 7  ;;  %v602_v25 = vld [vmem:[%s1047_s30 + $0x3c] sm:$0x1]  ;;  %v607_v34 = vmax.f32 %v599_v20, %v603_v26  ;;  %s975_s20 = smov 126  }
  0x20   : > { %v345_v27 = vsel %vm288_vm2, %v344_v1, %v343_v23  ;;  %v452_v28 = vrot.slane %v444_v18, 6  ;;  %v454_v29 = vrot.slane %v445_v19, 5  ;;  %v604_v30 = vld [vmem:[%s1047_s30 + $0x1d] sm:$0x1]  ;;  %v605_v31 = vld [vmem:[%s1047_s30 + $0x2d] sm:$0x1] }
  0x21   : > { %912 = vmatmul.msk.f32.vlgmr.msrb.gmra.mxu1 %vm290_vm3, %v345_v27  ;;  %v451_v32 = vsel %vm282_vm0, %v450_v24, %v442_v15  ;;  %v606_v33 = vld [vmem:[%s1047_s30 + $0x3d] sm:$0x1]  ;;  %v608_v35 = vmax.f32 %v600_v21, %v604_v30  ;;  %v609_v36 = vmax.f32 %v601_v22, %v605_v31  ;;  %v544_v37 = vld [vmem:[%s1047_s30 + $0xa] sm:$0x1]  ;;  %v545_v38 = vld [vmem:[%s1047_s30 + $0x1a] sm:$0x1] }
  0x22   : > { %v453_v39 = vsel %vm285_vm1, %v452_v28, %v451_v32  ;;  %v610_v40 = vmax.f32 %v602_v25, %v606_v33  ;;  %v546_v41 = vld [vmem:[%s1047_s30 + $0x2a] sm:$0x1]  ;;  %v547_v42 = vld [vmem:[%s1047_s30 + $0x3a] sm:$0x1]  ;;  %v548_v43 = vld [vmem:[%s1047_s30 + $0xb] sm:$0x1] }
  0x23   : > { %v455_v44 = vsel %vm288_vm2, %v454_v29, %v453_v39  ;;  %v615_v45 = vrot.slane %v608_v35, 7  ;;  %v617_v46 = vrot.slane %v609_v36, 6  ;;  %v549_v47 = vld [vmem:[%s1047_s30 + $0x1b] sm:$0x1]  ;;  %v550_v48 = vld [vmem:[%s1047_s30 + $0x2b] sm:$0x1]  ;;  %v552_v51 = vmax.f32 %v544_v37, %v548_v43 }
  0x24   : > { %914 = vmatmul.msk.f32.vlgmr.msra.gmra.mxu3 %vm290_vm3, %v455_v44  ;;  %v619_v49 = vrot.slane %v610_v40, 5  ;;  %v551_v50 = vld [vmem:[%s1047_s30 + $0x3b] sm:$0x1]  ;;  %v553_v52 = vmax.f32 %v545_v38, %v549_v47  ;;  %v554_v53 = vmax.f32 %v546_v41, %v550_v48  ;;  %v654_v54 = vld [vmem:[%s1047_s30 + $0xe] sm:$0x1]  ;;  %s976_s23 = smov 116  }
  0x25   : > { %v616_v55 = vsel %vm282_vm0, %v615_v45, %v607_v34  ;;  %v555_v56 = vmax.f32 %v547_v42, %v551_v50  ;;  %v655_v57 = vld [vmem:[%s1047_s30 + $0x1e] sm:$0x1]  ;;  %v656_v58 = vld [vmem:[%s1047_s30 + $0x2e] sm:$0x1]  ;;  %v658_v63 = vld [vmem:[%s1047_s30 + $0xf] sm:$0x1] }
  0x26   : > { %v657_v59 = vld [vmem:[%s1047_s30 + $0x3e] sm:$0x1]  ;;  %v618_v60 = vsel %vm285_vm1, %v617_v46, %v616_v55  ;;  %v560_v61 = vrot.slane %v553_v52, 7  ;;  %v562_v62 = vrot.slane %v554_v53, 6  ;;  %v659_v0 = vld [vmem:[%s1047_s30 + $0x1f] sm:$0x1]  ;;  %v662_v6 = vmax.f32 %v654_v54, %v658_v63 }
  0x27   : > { %v620_v2 = vsel %vm288_vm2, %v619_v49, %v618_v60  ;;  %v564_v3 = vrot.slane %v555_v56, 5  ;;  %v660_v4 = vld [vmem:[%s1047_s30 + $0x2f] sm:$0x1]  ;;  %v661_v5 = vld [vmem:[%s1047_s30 + $0x3f] sm:$0x1]  ;;  %v663_v7 = vmax.f32 %v655_v57, %v659_v0  ;;  %v970_v42 = vmov 0.0  }
  0x28   : > { %917 = vmatmul.msk.f32.vlgmr.msrb.gmra.mxu2 %vm290_vm3, %v620_v2  ;;  %v561_v8 = vsel %vm282_vm0, %v560_v61, %v552_v51  ;;  %v664_v9 = vmax.f32 %v656_v58, %v660_v4  ;;  %v665_v10 = vmax.f32 %v657_v59, %v661_v5  ;;  %262 = vst.msk [vmem:[#allocation2] sm:$0xf] %vm261_vm4, %v970_v42  ;;  %s977_s24 = smov 118   ;;  %s978_s25 = smov 127   ;;  %v766_v63 = vld [vmem:[%s1183_s2] sm:$0xff]  ;;  %v979_v0 = vmov 0  }
  0x29   : > { %v563_v11 = vsel %vm285_vm1, %v562_v62, %v561_v8  ;;  %v670_v12 = vrot.slane %v663_v7, 7  ;;  %951 = vset.pattern.permute.xlu0 %v979_v0  ;;  %vm776_vm14 = vcmask 1043456   ;;  %vm772_vm15 = vcmask 293888  }
  0x2a   : > { %v565_v1 = vsel %vm288_vm2, %v564_v3, %v563_v11  ;;  %v672_v13 = vrot.slane %v664_v9, 6  ;;  %v674_v14 = vrot.slane %v665_v10, 5  ;;  %v760_v11 = vld [vmem:[%s1182_s1] sm:$0xff] }
  0x2b   : > { %916 = vmatmul.msk.f32.vlgmr.msra.gmra.mxu1 %vm290_vm3, %v565_v1  ;;  %v671_v15 = vsel %vm282_vm0, %v670_v12, %v662_v6  ;;  %vm805_vm0 = vcmask 654336  }
  0x2c   : > { %v673_v16 = vsel %vm285_vm1, %v672_v13, %v671_v15  ;;  %v952_v13 = vld [vmem:[%s1185_s4] ss:$0 sm:$0xff]  ;;  %vm810_vm1 = vcmask 7168  }
  0x2d   : > { %v675_v17 = vsel %vm288_vm2, %v674_v14, %v673_v16  ;;  %vm816_vm2 = vcmask 15368  }
  0x2e   : > { %918 = vmatmul.msk.f32.vlgmr.msrb.gmra.mxu3 %vm290_vm3, %v675_v17 }
  0x94   : > { %v310_v18 = vpop.f32.mrf.mxu1 }
  0x95   : > { %314 = vrot.lane.b32.xlu0 %v310_v18, %s961_s7 }
  0x9b   : > { %v530_v19 = vpop.f32.mrf.mxu0 }
  0x9c   : > { %534 = vrot.lane.b32.xlu2 %v530_v19, %s961_s7 }
  0x9d   : > { %v420_v20 = vpop.f32.mrf.mxu2 }
  0x9e   : > { %424 = vrot.lane.b32.xlu1 %v420_v20, %s961_s7  ;;  %v365_v21 = vpop.f32.mrf.mxu1 }
  0x9f   : > { %369 = vrot.lane.b32.xlu0 %v365_v21, %s961_s7 }
  0xa7   : > { %v475_v22 = vpop.f32.mrf.mxu3 }
  0xa8   : > { %479 = vrot.lane.b32.xlu1 %v475_v22, %s961_s7  ;;  %v585_v23 = vpop.f32.mrf.mxu1 }
  0xa9   : > { %589 = vrot.lane.b32.xlu2 %v585_v23, %s961_s7 }
  0xab   : > { %v640_v24 = vpop.f32.mrf.mxu2 }
  0xac   : > { %644 = vrot.lane.b32.xlu0 %v640_v24, %s961_s7 }
  0xb1   : > { %v695_v25 = vpop.f32.mrf.mxu3 }
  0xb2   : > { %699 = vrot.lane.b32.xlu1 %v695_v25, %s961_s7 }
  0xf6   : > { %v535_v26 = vpop.permute.xlu2 %534 }
  0xf7   : > { %v537_v27 = vmax.f32 %v530_v19, %v535_v26 }
  0xf9   : > { %539 = vrot.lane.b32.xlu0 %v537_v27, %s962_s8  ;;  %s909_s8 = sshll.u32 %s1189_s22, 3 }
 0x103   : > { %v590_v34 = vpop.permute.xlu2 %589 }
 0x104   : > { %v592_v35 = vmax.f32 %v585_v23, %v590_v34 }
 0x107   : > { %v315_v28 = vpop.permute.xlu0 %314 }
 0x108   : > { %v317_v29 = vmax.f32 %v310_v18, %v315_v28 }
 0x10a   : > { %319 = vrot.lane.b32.xlu2 %v317_v29, %s963_s9 }
 0x110   : > { %v425_v30 = vpop.permute.xlu1 %424 }
 0x111   : > { %v427_v31 = vmax.f32 %v420_v20, %v425_v30  ;;  %v370_v32 = vpop.permute.xlu0 %369 }
 0x112   : > { %v372_v33 = vmax.f32 %v365_v21, %v370_v32 }
 0x113   : > { %429 = vrot.lane.b32.xlu1 %v427_v31, %s964_s10 }
 0x114   : > { %374 = vrot.lane.b32.xlu0 %v372_v33, %s965_s11  ;;  %s256_s11 = scalar_lea.vmem %s1186_s5, %s909_s8 }
 0x11a   : > { %v480_v36 = vpop.permute.xlu1 %479 }
 0x11b   : > { %v482_v37 = vmax.f32 %v475_v22, %v480_v36  ;;  %594 = vrot.lane.b32.xlu1 %v592_v35, %s966_s12 }
 0x11d   : > { %484 = vrot.lane.b32.xlu2 %v482_v37, %s967_s13 }
 0x11e   : > { %v645_v38 = vpop.permute.xlu0 %644 }
 0x11f   : > { %v647_v39 = vmax.f32 %v640_v24, %v645_v38 }
 0x124   : > { %v700_v40 = vpop.permute.xlu1 %699 }
 0x125   : > { %v702_v41 = vmax.f32 %v695_v25, %v700_v40  ;;  %649 = vrot.lane.b32.xlu2 %v647_v39, %s968_s14  ;;  %s260_s14 = scalar_lea.vmem %s1187_s6, %s909_s8 }
 0x127   : > { %704 = vrot.lane.b32.xlu0 %v702_v41, %s969_s15 }
 0x164   : > { %v320_v43 = vpop.permute.xlu2 %319 }
 0x165   : > { %323 = vst.msk [vmem:[#allocation2] sm:$0xf] %vm322_vm5, %v320_v43 }
 0x16b   : > { %v540_v44 = vpop.permute.xlu0 %539 }
 0x177   : > { %v485_v45 = vpop.permute.xlu2 %484 }
 0x17f   : > { %v650_v49 = vpop.permute.xlu2 %649 }
 0x185   : > { %v430_v46 = vpop.permute.xlu1 %429 }
 0x186   : > { %v375_v47 = vpop.permute.xlu0 %374 }
 0x187   : > { %378 = vst.msk [vmem:[#allocation2] sm:$0xf] %vm377_vm6, %v375_v47 }
 0x188   : > { %433 = vst.msk [vmem:[#allocation2] sm:$0xf] %vm432_vm7, %v430_v46 }
 0x189   : > { %488 = vst.msk [vmem:[#allocation2] sm:$0xf] %vm487_vm8, %v485_v45 }
 0x18a   : > { %543 = vst.msk [vmem:[#allocation2] sm:$0xf] %vm542_vm9, %v540_v44 }
 0x18d   : > { %v595_v48 = vpop.permute.xlu1 %594 }
 0x18e   : > { %598 = vst.msk [vmem:[#allocation2] sm:$0xf] %vm597_vm10, %v595_v48 }
 0x18f   : > { %653 = vst.msk [vmem:[#allocation2] sm:$0xf] %vm652_vm11, %v650_v49 }
 0x199   : > { %v705_v50 = vpop.permute.xlu0 %704 }
 0x19a   : > { %708 = vst.msk [vmem:[#allocation2] sm:$0xf] %vm707_vm12, %v705_v50 }
 0x1a1   : > { %v754_v51 = vld [vmem:[#allocation2] sm:$0xf] }
 0x1a2   : > { %v748_v52 = vld [vmem:[#allocation2] sm:$0xf]  ;;  %756 = vrot.lane.b32.xlu1 %v754_v51, %s971_s16 }
 0x1a3   : > { %v742_v53 = vld [vmem:[#allocation2] sm:$0xf]  ;;  %750 = vrot.lane.b32.xlu0 %v748_v52, %s972_s17 }
 0x1a4   : > { %744 = vrot.lane.b32.xlu2 %v742_v53, %s973_s18  ;;  %v709_v54 = vld [vmem:[#allocation2] sm:$0xf] }
 0x1a5   : > { %711 = vst.msk [vmem:[#allocation3] sm:$0xf] %vm710_vm13, %v709_v54  ;;  %v730_v55 = vld [vmem:[#allocation2] sm:$0xf] }
 0x1a6   : > { %v718_v56 = vld [vmem:[#allocation2] sm:$0xf] }
 0x1a7   : > { %v736_v57 = vld [vmem:[#allocation2] sm:$0xf] }
 0x1a8   : > { %v724_v58 = vld [vmem:[#allocation2] sm:$0xf] }
 0x1a9   : > { %v712_v59 = vld [vmem:[#allocation2] sm:$0xf] }
 0x1aa   : > { %732 = vrot.lane.b32.xlu1 %v730_v55, %s974_s19 }
 0x1ab   : > { %720 = vrot.lane.b32.xlu0 %v718_v56, %s975_s20 }
 0x1ac   : > { %738 = vrot.lane.b32.xlu2 %v736_v57, %s976_s23 }
 0x1b2   : > { %726 = vrot.lane.b32.xlu1 %v724_v58, %s977_s24 }
 0x1b3   : > { %769 = vperm.xlu0 %951, %v766_v63  }
 0x1b4   : > { %714 = vrot.lane.b32.xlu2 %v712_v59, %s978_s25 }
 0x1fe   : > { %v745_v60 = vpop.permute.xlu2 %744 }
 0x1ff   : > { %747 = vst.msk [vmem:[#allocation3 + $0x18] sm:$0xf] %vm710_vm13, %v745_v60 }
 0x206   : > { %v739_v61 = vpop.permute.xlu2 %738 }
 0x207   : > { %741 = vst.msk [vmem:[#allocation3 + $0x14] sm:$0xf] %vm710_vm13, %v739_v61 }
 0x20e   : > { %v715_v62 = vpop.permute.xlu2 %714 }
 0x20f   : > { %717 = vst.msk [vmem:[#allocation3 + $0x4] sm:$0xf] %vm710_vm13, %v715_v62 }
 0x214   : > { %v757_v2 = vpop.permute.xlu1 %756 }
 0x215   : > { %v751_v3 = vpop.permute.xlu0 %750  ;;  %759 = vst.msk [vmem:[#allocation3 + $0x20] sm:$0xf] %vm710_vm13, %v757_v2 }
 0x216   : > { %753 = vst.msk [vmem:[#allocation3 + $0x1c] sm:$0xf] %vm710_vm13, %v751_v3  ;;  %v761_v12 = vld [vmem:[#allocation3] sm:$0xff] }
 0x21c   : > { %v733_v4 = vpop.permute.xlu1 %732  ;;  %v765_v6 = vld [vmem:[#allocation3 + $0x20] sm:$0xf] }
 0x21d   : > { %v721_v5 = vpop.permute.xlu0 %720  ;;  %735 = vst.msk [vmem:[#allocation3 + $0x10] sm:$0xf] %vm710_vm13, %v733_v4  ;;  %919 = vmatpush.msk.msrb.mxu0 %vm776_vm14, %v765_v6  ;;  %v764_v7 = vld [vmem:[#allocation3 + $0x18] sm:$0xff] }
 0x21e   : > { %723 = vst.msk [vmem:[#allocation3 + $0x8] sm:$0xf] %vm710_vm13, %v721_v5 }
 0x21f   : > { %792 = vmatpush.msrb.mxu0 %v764_v7 }
 0x224   : > { %v727_v8 = vpop.permute.xlu1 %726  ;;  %v763_v9 = vld [vmem:[#allocation3 + $0x10] sm:$0xff] }
 0x225   : > { %729 = vst.msk [vmem:[#allocation3 + $0xc] sm:$0xf] %vm710_vm13, %v727_v8  ;;  %793 = vmatpush.msrb.mxu0 %v763_v9  ;;  %v770_v1 = vpop.permute.xlu0 %769 }
 0x22c   : > { %v762_v10 = vld [vmem:[#allocation3 + $0x8] sm:$0xff] }
 0x22d   : > { %794 = vmatpush.msrb.mxu0 %v762_v10 }
 0x22f   : > { %795 = vmatpush.msrb.mxu0 %v761_v12 }
 0x230   : > { %920 = vmatmul.msk.f32.vlgmr.msrb.gmra.mxu0 %vm772_vm15, %v760_v11 }
 0x2ad   : > { %v797_v14 = vpop.f32.mrf.mxu0 }
 0x2ae   : > { %v798_v15 = vadd.f32 %v797_v14, %v770_v1 }
 0x2b0   : > { %v804_v16 = vmul.f32 %v952_v13, %v798_v15 }
 0x2b2   : > { %v807_v17 = vsel %vm805_vm0, %v804_v16, 0.0  ;;  %806 = vst.msk [vmem:[%s256_s11] sm:$0xff] %vm805_vm0, %v804_v16  ;;  %v812_v18 = vmul.f32 %v804_v16, %v804_v16 }
 0x2b3   : > { %808 = vadd.xlane.f32.xlu1 %v807_v17 }
 0x2b4   : > { %v813_v19 = vsel %vm805_vm0, %v812_v18, 0.0 }
 0x2b5   : > { %814 = vadd.xlane.f32.xlu2 %v813_v19 }
 0x326   : > { %v809_v20 = vpop.xlane.xlu1 %808 }
 0x327   : > { %811 = vst.msk [vmem:[%s260_s14] sm:$0xff] %vm810_vm1, %v809_v20 }
 0x328   : > { %v815_v21 = vpop.xlane.xlu2 %814 }
 0x329   : > { %817 = vst.msk [vmem:[%s260_s14] sm:$0xff] %vm816_vm2, %v815_v21 }
 0x32a PF: > { %s17_s21 = sadd.s32 1, %s959_s21  }
 0x32b   : > { %p14_p4 = scmp.ge.s32.totalorder %s17_s21, 4  }
 0x32d   :  { %16 = sbr.rel (!%p14_p4) target bundleno = 1 (0x1), region = 82 }

</bundles_post_ra>
